<compile_context>
chip_gen: v7x
topology: tpu7x:2x2x1
jax: 0.10.0
libtpu: 0.0.40
codegen_flags: <defaults>
</compile_context>

<pallas_src>
import functools
import math

import numpy as np
import jax
import jax.numpy as jnp
from jax.experimental import pallas as pl
from jax.experimental.pallas import tpu as pltpu

LN_EPS = 1e-5


# ------------------------- hardware-aware knobs ------------------------------

_VMEM_BUDGET = None


def _vmem_budget_bytes():
    """~80% of per-core VMEM, leaving headroom for Mosaic internal scratch.
    v5e/v6e (128 MiB) get a much larger budget than v7x (64 MiB)."""
    global _VMEM_BUDGET
    if _VMEM_BUDGET is None:
        try:
            cap = int(pltpu.get_tpu_info().vmem_capacity_bytes)
        except Exception:
            cap = 64 * 1024 * 1024          # conservative fallback
        _VMEM_BUDGET = max(32 * 2**20, min(int(cap * 0.8), 104 * 2**20))
    return _VMEM_BUDGET


_SINGLE_BUFFER_OK = None


def _single_buffer_ok():
    """One-time probe: is BlockSpec(pipeline_mode=pl.Buffered(1)) supported?
    Used to stop double-buffering grid-constant weight/bias blocks."""
    global _SINGLE_BUFFER_OK
    if _SINGLE_BUFFER_OK is None:
        ok = False
        if hasattr(pl, "Buffered"):
            try:
                def _probe(x_ref, w_ref, o_ref):
                    o_ref[...] = x_ref[...] + w_ref[...]

                x = jnp.zeros((16, 128), jnp.float32)
                w = jnp.ones((1, 128), jnp.float32)
                out = pl.pallas_call(
                    _probe,
                    out_shape=jax.ShapeDtypeStruct((16, 128), jnp.float32),
                    grid=(2,),
                    in_specs=[pl.BlockSpec((8, 128), lambda i: (i, 0)),
                              pl.BlockSpec((1, 128), lambda i: (0, 0),
                                           pipeline_mode=pl.Buffered(1))],
                    out_specs=pl.BlockSpec((8, 128), lambda i: (i, 0)),
                )(x, w)
                jax.block_until_ready(out)
                ok = True
            except Exception:
                ok = False
        _SINGLE_BUFFER_OK = ok
    return _SINGLE_BUFFER_OK


def _const_spec(block_shape, index_map):
    """BlockSpec for blocks whose index never changes across the grid (weights,
    biases, resident rel-pos bias): single-buffer them when supported -- the
    second pipeline buffer is pure VMEM waste for constant blocks."""
    if _single_buffer_ok():
        return pl.BlockSpec(block_shape, index_map, pipeline_mode=pl.Buffered(1))
    return pl.BlockSpec(block_shape, index_map)


def _ln_row_cap():
    return 1024 if _vmem_budget_bytes() >= 80 * 2**20 else 512


def _mlp_row_cap(c, hidden):
    cap = 512 if _vmem_budget_bytes() >= 80 * 2**20 else 256
    # keep the f32 (tm, hidden) intermediate + a few (tm, c) f32 tensors well
    # inside the budget
    while cap > 16 and cap * (hidden + 4 * c) * 4 * 3 > _vmem_budget_bytes() // 2:
        cap //= 2
    return cap


def _row_tile(m, cap):
    """Largest multiple-of-8 divisor of m that is <= cap (or m itself)."""
    if m <= cap:
        return m
    start = min(cap, m)
    start -= start % 8
    for t in range(start, 7, -8):
        if m % t == 0:
            return t
    # TODO(synk): awkward row counts with no multiple-of-8 divisor <= cap fall
    # back to one big tile; pad rows in the wrapper if that ever exceeds VMEM.
    return m


def _pick_window_block(n_windows_per_image, batch, n_tok, max_rows=256, min_steps=8):
    """Largest window-block (divisor of nW/image) with <= max_rows token rows,
    preferring configurations that give >= 8 grid steps (keeps both v7x
    TensorCores busy and the input DMA pipelined)."""
    total_w = batch * n_windows_per_image
    divs = [d for d in range(1, n_windows_per_image + 1)
            if n_windows_per_image % d == 0]
    for steps_floor in (min_steps, 4, 1):
        cands = [d for d in divs
                 if d * n_tok <= max_rows and total_w // d >= steps_floor]
        if cands:
            return max(cands)
    return 1


# ----------------------------- Pallas kernels ------------------------------

def _layernorm_kernel(x_ref, g_ref, b_ref, o_ref):
    x = x_ref[...].astype(jnp.float32)
    mean = jnp.mean(x, axis=-1, keepdims=True)
    var = jnp.mean(jnp.square(x - mean), axis=-1, keepdims=True)
    y = (x - mean) * jax.lax.rsqrt(var + LN_EPS)
    o_ref[...] = (y * g_ref[...] + b_ref[...]).astype(o_ref.dtype)


def _attn_kernel(x_ref, g1_ref, b1_ref, wqkv_ref, relb_ref, *rest,
                 num_heads, head_dim, fuse_norm1, add_mask, batched_heads):
    # x_ref block: (w_blk windows, N tokens, C) bf16.  All MXU matmuls take bf16
    # operands and accumulate in f32.  The softmax scale is pre-folded into the
    # q-columns of wqkv, so no per-head scale multiply is needed here.
    if add_mask:
        mask_ref, wproj_ref, bproj_ref, o_ref = rest
    else:
        wproj_ref, bproj_ref, o_ref = rest
        mask_ref = None

    wb, n, c = x_ref.shape
    x = x_ref[...].astype(jnp.float32)
    if fuse_norm1:                                            # LayerNorm1 fused
        mean = jnp.mean(x, axis=-1, keepdims=True)
        var = jnp.mean(jnp.square(x - mean), axis=-1, keepdims=True)
        x = (x - mean) * jax.lax.rsqrt(var + LN_EPS) * g1_ref[...] + b1_ref[...]
    m = wb * n
    # One big (M, C) @ (C, 3C) qkv matmul over all windows in the block.
    qkv = jnp.dot(x.reshape(m, c).astype(jnp.bfloat16), wqkv_ref[...],
                  preferred_element_type=jnp.float32)         # (m, 3c) f32
    rel_b = relb_ref[...]                                     # (nh, N, N) resident

    if batched_heads:
        # Single head split + batched einsums: one relayout instead of per-head
        # lane slices, and no per-head live ranges / concatenate.
        qkv5 = qkv.reshape(wb, n, 3, num_heads, head_dim)
        q = qkv5[:, :, 0].astype(jnp.bfloat16)                # (wb, n, nh, hd)
        k = qkv5[:, :, 1].astype(jnp.bfloat16)
        v = qkv5[:, :, 2].astype(jnp.bfloat16)
        s = jnp.einsum('wqhd,wkhd->whqk', q, k,
                       preferred_element_type=jnp.float32)    # (wb, nh, N, N)
        s = s + rel_b[None]                                   # rel-pos bias
        if add_mask:
            s = s + mask_ref[...][:, None]                    # shift mask
        s = s - jnp.max(s, axis=-1, keepdims=True)
        p = jnp.exp(s)
        # EUP reciprocal instead of VPU divide.
        p = p * pl.reciprocal(jnp.sum(p, axis=-1, keepdims=True), approx=True)
        o = jnp.einsum('whqk,wkhd->wqhd', p.astype(jnp.bfloat16), v,
                       preferred_element_type=jnp.float32)    # (wb, N, nh, hd)
        o = o.reshape(m, c)
    else:
        # TODO(synk): fallback per-head loop (higher vreg pressure at nh>=8);
        # only used if the batched-head einsum path fails to lower.
        mask_b = mask_ref[...] if add_mask else None
        heads = []
        for h in range(num_heads):
            q = qkv[:, h * head_dim:(h + 1) * head_dim].reshape(wb, n, head_dim)
            k = qkv[:, c + h * head_dim: c + (h + 1) * head_dim].reshape(wb, n, head_dim)
            v = qkv[:, 2 * c + h * head_dim: 2 * c + (h + 1) * head_dim].reshape(wb, n, head_dim)
            s = jnp.einsum('wqd,wkd->wqk', q.astype(jnp.bfloat16),
                           k.astype(jnp.bfloat16),
                           preferred_element_type=jnp.float32)
            s = s + rel_b[h]
            if add_mask:
                s = s + mask_b
            s = s - jnp.max(s, axis=-1, keepdims=True)
            p = jnp.exp(s)
            p = p * pl.reciprocal(jnp.sum(p, axis=-1, keepdims=True), approx=True)
            heads.append(jnp.einsum('wqk,wkd->wqd', p.astype(jnp.bfloat16),
                                    v.astype(jnp.bfloat16),
                                    preferred_element_type=jnp.float32))
        o = jnp.concatenate(heads, axis=-1).reshape(m, c)

    # Single (M, C) @ (C, C) output projection (full-K matmul).
    proj = jnp.dot(o.astype(jnp.bfloat16), wproj_ref[...],
                   preferred_element_type=jnp.float32) + bproj_ref[...]
    # TODO(synk): for C < 128 a lane-dense (w_blk, N*C) output layout would avoid
    # masked stores, but it needs w_blk % 8 == 0 which conflicts with the >=8
    # grid-step sizing at small total window counts; kept 3-D output.
    o_ref[...] = proj.reshape(wb, n, c).astype(o_ref.dtype)


def _mlp_residual_kernel(sc_ref, y_ref, g_ref, b_ref, w1_ref, b1_ref,
                         w2_ref, b2_ref, o_ref):
    # x = shortcut + attention_branch ; out = x + Lin2(GELU(Lin1(LN2(x))))
    x = sc_ref[...].astype(jnp.float32) + y_ref[...].astype(jnp.float32)
    mean = jnp.mean(x, axis=-1, keepdims=True)
    var = jnp.mean(jnp.square(x - mean), axis=-1, keepdims=True)
    xn = (x - mean) * jax.lax.rsqrt(var + LN_EPS) * g_ref[...] + b_ref[...]
    h = jnp.dot(xn.astype(jnp.bfloat16), w1_ref[...],
                preferred_element_type=jnp.float32) + b1_ref[...]
    # TODO(synk): nn.GELU() is exact erf-GELU; erf has no guaranteed Pallas TPU
    # lowering, so the tanh approximation is used in-kernel (~1e-3 rel diff).
    c0 = math.sqrt(2.0 / math.pi)
    h = 0.5 * h * (1.0 + jnp.tanh(c0 * (h + 0.044715 * (h * h * h))))
    y2 = jnp.dot(h.astype(jnp.bfloat16), w2_ref[...],
                 preferred_element_type=jnp.float32) + b2_ref[...]
    o_ref[...] = (x + y2).astype(o_ref.dtype)


# ----------------------------- kernel wrappers ------------------------------

def layernorm_pallas(x2d, gamma, beta):
    m, c = x2d.shape
    tm = _row_tile(m, _ln_row_cap())
    return pl.pallas_call(
        _layernorm_kernel,
        out_shape=jax.ShapeDtypeStruct((m, c), x2d.dtype),
        grid=(m // tm,),
        in_specs=[pl.BlockSpec((tm, c), lambda i: (i, 0)),
                  _const_spec((1, c), lambda i: (0, 0)),
                  _const_spec((1, c), lambda i: (0, 0))],
        out_specs=pl.BlockSpec((tm, c), lambda i: (i, 0)),
        compiler_params=pltpu.CompilerParams(
            dimension_semantics=("parallel",),
            vmem_limit_bytes=_vmem_budget_bytes()),
    )(x2d, gamma, beta)


_ATTN_BATCHED = None       # None = untested, True/False decided on first call


def window_attention_pallas(xw, g1, b1, wqkv, rel_bias, mask, wproj, bproj,
                            num_heads, *, n_windows_per_image, batch, fuse_norm1):
    # xw: (b * nW, N, C) bf16.  rel_bias: (nh, N, N) f32 (resident).
    # mask: None (no shift) or (nW, N, N) f32, streamed (w_blk, N, N) per step.
    global _ATTN_BATCHED
    total_w, n_tok, c = xw.shape
    head_dim = c // num_heads
    w_blk = _pick_window_block(n_windows_per_image, batch, n_tok)
    add_mask = mask is not None

    in_specs = [
        pl.BlockSpec((w_blk, n_tok, c), lambda i: (i, 0, 0)),
        _const_spec((1, c), lambda i: (0, 0)),
        _const_spec((1, c), lambda i: (0, 0)),
        _const_spec((c, 3 * c), lambda i: (0, 0)),
        _const_spec((num_heads, n_tok, n_tok), lambda i: (0, 0, 0)),
    ]
    args = [xw, g1, b1, wqkv, rel_bias]
    if add_mask:
        bpi = n_windows_per_image // w_blk
        mask_map = (lambda i: (0, 0, 0)) if bpi == 1 else (lambda i: (i % bpi, 0, 0))
        in_specs.append(pl.BlockSpec((w_blk, n_tok, n_tok), mask_map))
        args.append(mask)
    in_specs += [_const_spec((c, c), lambda i: (0, 0)),
                 _const_spec((1, c), lambda i: (0, 0))]
    args += [wproj, bproj]

    def build(batched):
        kernel = functools.partial(
            _attn_kernel, num_heads=num_heads, head_dim=head_dim,
            fuse_norm1=fuse_norm1, add_mask=add_mask, batched_heads=batched)
        return pl.pallas_call(
            kernel,
            # bf16 output halves writeback + window_reverse/roll glue traffic.
            out_shape=jax.ShapeDtypeStruct((total_w, n_tok, c), jnp.bfloat16),
            grid=(total_w // w_blk,),
            in_specs=in_specs,
            out_specs=pl.BlockSpec((w_blk, n_tok, c), lambda i: (i, 0, 0)),
            compiler_params=pltpu.CompilerParams(
                dimension_semantics=("parallel",),
                vmem_limit_bytes=_vmem_budget_bytes()))

    if _ATTN_BATCHED is None:
        try:
            out = build(True)(*args)
            jax.block_until_ready(out)          # surface lowering problems now
            _ATTN_BATCHED = True
            return out
        except Exception:
            _ATTN_BATCHED = False
    return build(_ATTN_BATCHED)(*args)


def mlp_residual_pallas(shortcut2d, y2d, gamma, beta, w1, b1, w2, b2):
    m, c = shortcut2d.shape
    hidden = w1.shape[1]
    tm = _row_tile(m, _mlp_row_cap(c, hidden))
    return pl.pallas_call(
        _mlp_residual_kernel,
        out_shape=jax.ShapeDtypeStruct((m, c), shortcut2d.dtype),
        grid=(m // tm,),
        in_specs=[pl.BlockSpec((tm, c), lambda i: (i, 0)),
                  pl.BlockSpec((tm, c), lambda i: (i, 0)),
                  _const_spec((1, c), lambda i: (0, 0)),
                  _const_spec((1, c), lambda i: (0, 0)),
                  _const_spec((c, hidden), lambda i: (0, 0)),
                  _const_spec((1, hidden), lambda i: (0, 0)),
                  _const_spec((hidden, c), lambda i: (0, 0)),
                  _const_spec((1, c), lambda i: (0, 0))],
        out_specs=pl.BlockSpec((tm, c), lambda i: (i, 0)),
        compiler_params=pltpu.CompilerParams(
            dimension_semantics=("parallel",),
            vmem_limit_bytes=_vmem_budget_bytes()),
    )(shortcut2d, y2d, gamma, beta, w1, b1, w2, b2)


# ------------------------------- JAX glue -----------------------------------

def get_window_size(x_size, window_size, shift_size):
    use_ws = list(window_size)
    use_ss = list(shift_size)
    for i in range(len(x_size)):
        if x_size[i] <= window_size[i]:
            use_ws[i] = x_size[i]
            use_ss[i] = 0
    return tuple(use_ws), tuple(use_ss)


def window_partition(x, ws):
    b, h, w, c = x.shape
    x = x.reshape(b, h // ws[0], ws[0], w // ws[1], ws[1], c)
    x = jnp.transpose(x, (0, 1, 3, 2, 4, 5))
    return x.reshape(b, (h // ws[0]) * (w // ws[1]), ws[0] * ws[1], c)


def window_reverse(windows, ws, b, h, w):
    c = windows.shape[-1]
    x = windows.reshape(b, h // ws[0], w // ws[1], ws[0], ws[1], c)
    x = jnp.transpose(x, (0, 1, 3, 2, 4, 5))
    return x.reshape(b, h, w, c)


def compute_mask_2d(hp, wp, window_size, shift_size):
    img_mask = np.zeros((1, hp, wp, 1), dtype=np.float32)
    cnt = 0
    h_slices = (slice(None, -window_size[0]),
                slice(-window_size[0], -shift_size[0]),
                slice(-shift_size[0], None))
    w_slices = (slice(None, -window_size[1]),
                slice(-window_size[1], -shift_size[1]),
                slice(-shift_size[1], None))
    for hs in h_slices:
        for wslc in w_slices:
            img_mask[:, hs, wslc, :] = cnt
            cnt += 1
    mw = img_mask.reshape(1, hp // window_size[0], window_size[0],
                          wp // window_size[1], window_size[1], 1)
    mw = mw.transpose(0, 1, 3, 2, 4, 5).reshape(-1, window_size[0] * window_size[1])
    attn_mask = mw[:, None, :] - mw[:, :, None]
    attn_mask = np.where(attn_mask != 0, -100.0, 0.0).astype(np.float32)
    return jnp.asarray(attn_mask)                     # (nW, N, N)


def relative_position_index_2d(ws):
    coords = np.stack(np.meshgrid(np.arange(ws[0]), np.arange(ws[1]), indexing="ij"))
    cf = coords.reshape(2, -1)
    rel = cf[:, :, None] - cf[:, None, :]
    rel = rel.transpose(1, 2, 0).astype(np.int64)
    rel[:, :, 0] += ws[0] - 1
    rel[:, :, 1] += ws[1] - 1
    rel[:, :, 0] *= 2 * ws[1] - 1
    return rel.sum(-1)                                # (N, N)


def init_block_params(key, dim, num_heads, window_size, mlp_ratio):
    hidden = int(dim * mlp_ratio)
    n_rel = (2 * window_size[0] - 1) * (2 * window_size[1] - 1)
    ks = jax.random.split(key, 8)
    s = 0.02
    return dict(
        g1=jnp.ones((1, dim), jnp.float32),
        b1=jnp.zeros((1, dim), jnp.float32),
        wqkv=jax.random.normal(ks[0], (dim, 3 * dim), jnp.float32) * s,  # qkv_bias=False
        rel_table=jax.random.normal(ks[1], (n_rel, num_heads), jnp.float32) * s,
        wproj=jax.random.normal(ks[2], (dim, dim), jnp.float32) * s,
        bproj=jax.random.normal(ks[3], (1, dim), jnp.float32) * s,
        g2=jnp.ones((1, dim), jnp.float32),
        b2=jnp.zeros((1, dim), jnp.float32),
        w1=jax.random.normal(ks[4], (dim, hidden), jnp.float32) * s,
        bw1=jax.random.normal(ks[5], (1, hidden), jnp.float32) * s,
        w2=jax.random.normal(ks[6], (hidden, dim), jnp.float32) * s,
        bw2=jax.random.normal(ks[7], (1, dim), jnp.float32) * s,
    )


def prepare_block_params(p, dim, num_heads):
    """One-time weight prep: fold the softmax scale into the q-columns of Wqkv
    (zero runtime cost) and pre-cast the big matmul weights to bf16."""
    head_dim = dim // num_heads
    scale = head_dim ** -0.5
    wqkv_scaled = p["wqkv"].at[:, :dim].multiply(scale)
    q = dict(p)
    q["wqkv_bf16"] = wqkv_scaled.astype(jnp.bfloat16)
    q["wproj_bf16"] = p["wproj"].astype(jnp.bfloat16)
    q["w1_bf16"] = p["w1"].astype(jnp.bfloat16)
    q["w2_bf16"] = p["w2"].astype(jnp.bfloat16)
    return q


def swin_block_forward(x, p, rel_index, window_size, shift_size, attn_mask, num_heads):
    b, h, w, c = x.shape
    shortcut = x
    ws, ss = get_window_size((h, w), window_size, shift_size)

    pad_b = (ws[0] - h % ws[0]) % ws[0]
    pad_r = (ws[1] - w % ws[1]) % ws[1]
    # LayerNorm1 is per-token, so it commutes with roll/partition; fuse it into
    # the attention kernel whenever no zero-padding is needed (exact semantics).
    fuse_norm1 = (pad_b == 0 and pad_r == 0)
    if fuse_norm1:
        base = x
    else:
        # TODO(synk): standalone LN costs an extra HBM round trip of the whole
        # activation; prefer padding-free input sizes (always true in the demo).
        base = layernorm_pallas(x.reshape(-1, c), p["g1"], p["b1"]).reshape(b, h, w, c)
        base = jnp.pad(base, ((0, 0), (0, pad_b), (0, pad_r), (0, 0)))
    hp, wp = h + pad_b, w + pad_r

    do_shift = any(i > 0 for i in ss)
    shifted = jnp.roll(base, shift=(-ss[0], -ss[1]), axis=(1, 2)) if do_shift else base

    xw = window_partition(shifted, ws)                 # (b, nW, N, c)
    n_windows, n_tok = xw.shape[1], xw.shape[2]
    xw = xw.reshape(b * n_windows, n_tok, c).astype(jnp.bfloat16)
    # TODO(synk): for windows with N not a multiple of 8 (e.g. 7x7 -> N=49) pad
    # N to a multiple of 8 (masking pad keys via the bias) to avoid in-kernel
    # sublane relayouts.

    rel_bias = p["rel_table"][rel_index[:n_tok, :n_tok].reshape(-1)]
    rel_bias = rel_bias.reshape(n_tok, n_tok, num_heads)
    rel_bias = jnp.transpose(rel_bias, (2, 0, 1)).astype(jnp.float32)   # (nh, N, N)
    mask = attn_mask if do_shift else None             # (nW, N, N) streamed, not pre-added

    attn_out = window_attention_pallas(
        xw, p["g1"], p["b1"], p["wqkv_bf16"], rel_bias, mask,
        p["wproj_bf16"], p["bproj"], num_heads,
        n_windows_per_image=n_windows, batch=b, fuse_norm1=fuse_norm1)
    attn_out = attn_out.reshape(b, n_windows, n_tok, c)   # bf16

    shifted_out = window_reverse(attn_out, ws, b, hp, wp)
    xr = jnp.roll(shifted_out, shift=(ss[0], ss[1]), axis=(1, 2)) if do_shift else shifted_out
    xr = xr[:, :h, :w, :]

    # residual + norm2 + MLP + residual (fused Pallas kernel; add done in f32)
    out = mlp_residual_pallas(shortcut.reshape(-1, c), xr.reshape(-1, c),
                              p["g2"], p["b2"],
                              p["w1_bf16"], p["bw1"],
                              p["w2_bf16"], p["bw2"])
    return out.reshape(b, h, w, c)


def basic_layer_forward(x_nchw, blocks_params, rel_index, window_size,
                        shift_size, num_heads):
    b, c, h, w = x_nchw.shape
    ws, ss = get_window_size((h, w), window_size, shift_size)
    x = jnp.transpose(x_nchw, (0, 2, 3, 1))            # b c h w -> b h w c
    hp = int(np.ceil(h / ws[0])) * ws[0]
    wp = int(np.ceil(w / ws[1])) * ws[1]
    attn_mask = compute_mask_2d(hp, wp, ws, ss) if any(i > 0 for i in ss) else None
    no_shift = tuple(0 for _ in ws)
    prepped = [prepare_block_params(p, c, num_heads) for p in blocks_params]
    for i, p in enumerate(prepped):
        blk_shift = no_shift if i % 2 == 0 else ss
        x = swin_block_forward(x, p, rel_index, ws, blk_shift, attn_mask, num_heads)
    x = x.reshape(b, h, w, -1)
    # downsample=None (module default) -> identity
    return jnp.transpose(x, (0, 3, 1, 2))              # b h w c -> b c h w


# --------------------------------- main --------------------------------------

if __name__ == "__main__":
    B, C, H, W = 2, 32, 16, 16
    depth = 2
    num_heads = 2
    window_size = (4, 4)
    shift_size = tuple(i // 2 for i in window_size)
    mlp_ratio = 4.0

    key = jax.random.PRNGKey(0)
    kx, kp = jax.random.split(key)
    x = jax.random.normal(kx, (B, C, H, W), dtype=jnp.float32)

    block_keys = jax.random.split(kp, depth)
    blocks_params = [init_block_params(block_keys[i], C, num_heads,
                                       window_size, mlp_ratio)
                     for i in range(depth)]
    rel_index = relative_position_index_2d(window_size)

    out = basic_layer_forward(x, blocks_params, rel_index,
                              window_size, shift_size, num_heads)
    out = jax.block_until_ready(out)
    assert out.shape == (B, C, H, W), out.shape
    assert bool(jnp.all(jnp.isfinite(out)))
    print("KERNEL_OK")
</pallas_src>

<mosaic_0001>
module attributes {stable_mosaic.version = 11 : i64} {
  func.func @_probe(%arg0: i32, %arg1: memref<8x128xf32, #tpu.memory_space<vmem>>, %arg2: memref<1x128xf32, #tpu.memory_space<vmem>>, %arg3: memref<8x128xf32, #tpu.memory_space<vmem>>) attributes {dimension_semantics = [#tpu.dimension_semantics<arbitrary>], iteration_bounds = array<i64: 2>, scalar_prefetch = 0 : i64, scratch_operands = 0 : i64, tpu.core_type = #tpu.core_type<tc>, window_params = [{transform_indices = @transform_0, window_bounds = array<i64: 8, 128>}, {pipeline_mode = #tpu.pipeline_mode<synchronous>, transform_indices = @transform_1, window_bounds = array<i64: 1, 128>}, {transform_indices = @transform_2, window_bounds = array<i64: 8, 128>}]} {
    %c0 = arith.constant 0 : index
    %c0_0 = arith.constant 0 : index
    %0 = vector.load %arg1[%c0, %c0_0] : memref<8x128xf32, #tpu.memory_space<vmem>>, vector<8x128xf32>
    %c0_1 = arith.constant 0 : index
    %c0_2 = arith.constant 0 : index
    %1 = vector.load %arg2[%c0_1, %c0_2] : memref<1x128xf32, #tpu.memory_space<vmem>>, vector<1x128xf32>
    %2 = vector.broadcast %1 : vector<1x128xf32> to vector<8x128xf32>
    %3 = arith.addf %0, %2 : vector<8x128xf32>
    %c0_3 = arith.constant 0 : index
    %c0_4 = arith.constant 0 : index
    %4 = vector.load %arg3[%c0_3, %c0_4] : memref<8x128xf32, #tpu.memory_space<vmem>>, vector<8x128xf32>
    tpu.vector_store %arg3[%c0_3, %c0_4], %3 {strides = array<i32>} : memref<8x128xf32, #tpu.memory_space<vmem>>, vector<8x128xf32>,
    return
  }
  func.func @transform_0(%arg0: i32) -> (i32, i32) {
    %c0_i32 = arith.constant 0 : i32
    %c0_i32_0 = arith.constant 0 : i32
    return %arg0, %c0_i32 : i32, i32
  }
  func.func @transform_1(%arg0: i32) -> (i32, i32) {
    %c0_i32 = arith.constant 0 : i32
    %c0_i32_0 = arith.constant 0 : i32
    %c0_i32_1 = arith.constant 0 : i32
    return %c0_i32, %c0_i32_0 : i32, i32
  }
  func.func @transform_2(%arg0: i32) -> (i32, i32) {
    %c0_i32 = arith.constant 0 : i32
    %c0_i32_0 = arith.constant 0 : i32
    return %arg0, %c0_i32 : i32, i32
  }
}

module attributes {stable_mosaic.version = 11 : i64} {
  func.func @_attn_kernel(%arg0: i32, %arg1: memref<4x16x32xbf16, #tpu.memory_space<vmem>>, %arg2: memref<1x32xf32, #tpu.memory_space<vmem>>, %arg3: memref<1x32xf32, #tpu.memory_space<vmem>>, %arg4: memref<32x96xbf16, #tpu.memory_space<vmem>>, %arg5: memref<2x16x16xf32, #tpu.memory_space<vmem>>, %arg6: memref<32x32xbf16, #tpu.memory_space<vmem>>, %arg7: memref<1x32xf32, #tpu.memory_space<vmem>>, %arg8: memref<4x16x32xbf16, #tpu.memory_space<vmem>>) attributes {dimension_semantics = [#tpu.dimension_semantics<parallel>], iteration_bounds = array<i64: 8>, scalar_prefetch = 0 : i64, scratch_operands = 0 : i64, tpu.core_type = #tpu.core_type<tc>, window_params = [{transform_indices = @transform_0, window_bounds = array<i64: 4, 16, 32>}, {pipeline_mode = #tpu.pipeline_mode<synchronous>, transform_indices = @transform_1, window_bounds = array<i64: 1, 32>}, {pipeline_mode = #tpu.pipeline_mode<synchronous>, transform_indices = @transform_2, window_bounds = array<i64: 1, 32>}, {pipeline_mode = #tpu.pipeline_mode<synchronous>, transform_indices = @transform_3, window_bounds = array<i64: 32, 96>}, {pipeline_mode = #tpu.pipeline_mode<synchronous>, transform_indices = @transform_4, window_bounds = array<i64: 2, 16, 16>}, {pipeline_mode = #tpu.pipeline_mode<synchronous>, transform_indices = @transform_5, window_bounds = array<i64: 32, 32>}, {pipeline_mode = #tpu.pipeline_mode<synchronous>, transform_indices = @transform_6, window_bounds = array<i64: 1, 32>}, {transform_indices = @transform_7, window_bounds = array<i64: 4, 16, 32>}]} {
    %c0 = arith.constant 0 : index
    %c0_0 = arith.constant 0 : index
    %c0_1 = arith.constant 0 : index
    %0 = vector.load %arg1[%c0, %c0_0, %c0_1] : memref<4x16x32xbf16, #tpu.memory_space<vmem>>, vector<4x16x32xbf16>
    %1 = arith.extf %0 : vector<4x16x32xbf16> to vector<4x16x32xf32>
    %cst = arith.constant dense<0.000000e+00> : vector<4x16xf32>
    %2 = vector.multi_reduction <add>, %1, %cst [2] : vector<4x16x32xf32> to vector<4x16xf32>
    %3 = vector.shape_cast %2 : vector<4x16xf32> to vector<4x16x1xf32>
    %cst_2 = arith.constant 3.200000e+01 : f32
    %4 = vector.broadcast %cst_2 : f32 to vector<4x16x1xf32>
    %5 = arith.divf %3, %4 : vector<4x16x1xf32>
    %6 = vector.broadcast %5 : vector<4x16x1xf32> to vector<4x16x32xf32>
    %7 = arith.subf %1, %6 : vector<4x16x32xf32>
    %8 = arith.mulf %7, %7 : vector<4x16x32xf32>
    %cst_3 = arith.constant dense<0.000000e+00> : vector<4x16xf32>
    %9 = vector.multi_reduction <add>, %8, %cst_3 [2] : vector<4x16x32xf32> to vector<4x16xf32>
    %10 = vector.shape_cast %9 : vector<4x16xf32> to vector<4x16x1xf32>
    %cst_4 = arith.constant 3.200000e+01 : f32
    %11 = vector.broadcast %cst_4 : f32 to vector<4x16x1xf32>
    %12 = arith.divf %10, %11 : vector<4x16x1xf32>
    %13 = vector.broadcast %5 : vector<4x16x1xf32> to vector<4x16x32xf32>
    %14 = arith.subf %1, %13 : vector<4x16x32xf32>
    %cst_5 = arith.constant 9.99999974E-6 : f32
    %15 = vector.broadcast %cst_5 : f32 to vector<4x16x1xf32>
    %16 = arith.addf %12, %15 : vector<4x16x1xf32>
    %17 = math.rsqrt %16 : vector<4x16x1xf32>
    %18 = vector.broadcast %17 : vector<4x16x1xf32> to vector<4x16x32xf32>
    %19 = arith.mulf %14, %18 : vector<4x16x32xf32>
    %c0_6 = arith.constant 0 : index
    %c0_7 = arith.constant 0 : index
    %20 = vector.load %arg2[%c0_6, %c0_7] : memref<1x32xf32, #tpu.memory_space<vmem>>, vector<1x32xf32>
    %21 = vector.shape_cast %20 : vector<1x32xf32> to vector<1x1x32xf32>
    %22 = vector.broadcast %21 : vector<1x1x32xf32> to vector<4x16x32xf32>
    %23 = arith.mulf %19, %22 : vector<4x16x32xf32>
    %c0_8 = arith.constant 0 : index
    %c0_9 = arith.constant 0 : index
    %24 = vector.load %arg3[%c0_8, %c0_9] : memref<1x32xf32, #tpu.memory_space<vmem>>, vector<1x32xf32>
    %25 = vector.shape_cast %24 : vector<1x32xf32> to vector<1x1x32xf32>
    %26 = vector.broadcast %25 : vector<1x1x32xf32> to vector<4x16x32xf32>
    %27 = arith.addf %23, %26 : vector<4x16x32xf32>
    %28 = vector.shape_cast %27 : vector<4x16x32xf32> to vector<64x32xf32>
    %29 = arith.truncf %28 : vector<64x32xf32> to vector<64x32xbf16>
    %c0_10 = arith.constant 0 : index
    %c0_11 = arith.constant 0 : index
    %30 = vector.load %arg4[%c0_10, %c0_11] : memref<32x96xbf16, #tpu.memory_space<vmem>>, vector<32x96xbf16>
    %cst_12 = arith.constant dense<0.000000e+00> : vector<64x96xf32>
    %31 = tpu.matmul %29, %30, %cst_12 {dimension_numbers = #tpu.dot_dimension_numbers<[1], [0], [0], [1], [0, 0, 1, 1], [], []>} : vector<64x32xbf16>, vector<32x96xbf16>, vector<64x96xf32> -> vector<64x96xf32>
    %c0_13 = arith.constant 0 : index
    %c0_14 = arith.constant 0 : index
    %c0_15 = arith.constant 0 : index
    %32 = vector.load %arg5[%c0_13, %c0_14, %c0_15] : memref<2x16x16xf32, #tpu.memory_space<vmem>>, vector<2x16x16xf32>
    %33 = vector.extract_strided_slice %31 {offsets = [0, 0], sizes = [64, 16], strides = [1, 1]} : vector<64x96xf32> to vector<64x16xf32>
    %34 = vector.shape_cast %33 : vector<64x16xf32> to vector<4x16x16xf32>
    %35 = vector.extract_strided_slice %31 {offsets = [0, 32], sizes = [64, 16], strides = [1, 1]} : vector<64x96xf32> to vector<64x16xf32>
    %36 = vector.shape_cast %35 : vector<64x16xf32> to vector<4x16x16xf32>
    %37 = vector.extract_strided_slice %31 {offsets = [0, 64], sizes = [64, 16], strides = [1, 1]} : vector<64x96xf32> to vector<64x16xf32>
    %38 = vector.shape_cast %37 : vector<64x16xf32> to vector<4x16x16xf32>
    %39 = arith.truncf %34 : vector<4x16x16xf32> to vector<4x16x16xbf16>
    %40 = arith.truncf %36 : vector<4x16x16xf32> to vector<4x16x16xbf16>
    "tpu.trace_start"() <{level = 10 : i32, message = "wqd,wkd->wqk"}> : () -> ()
    %cst_16 = arith.constant dense<0.000000e+00> : vector<4x16x16xf32>
    %41 = tpu.matmul %39, %40, %cst_16 {dimension_numbers = #tpu.dot_dimension_numbers<[2], [2], [1], [1], [0, 0, 0, 1, 1, 1], [0], [0]>} : vector<4x16x16xbf16>, vector<4x16x16xbf16>, vector<4x16x16xf32> -> vector<4x16x16xf32>
    "tpu.trace_stop"() : () -> ()
    %42 = vector.extract_strided_slice %32 {offsets = [0, 0, 0], sizes = [1, 16, 16], strides = [1, 1, 1]} : vector<2x16x16xf32> to vector<1x16x16xf32>
    %43 = vector.shape_cast %42 : vector<1x16x16xf32> to vector<16x16xf32>
    %44 = vector.shape_cast %43 : vector<16x16xf32> to vector<1x16x16xf32>
    %45 = vector.broadcast %44 : vector<1x16x16xf32> to vector<4x16x16xf32>
    %46 = arith.addf %41, %45 : vector<4x16x16xf32>
    %cst_17 = arith.constant dense<0xFF800000> : vector<4x16xf32>
    %47 = vector.multi_reduction <maximumf>, %46, %cst_17 [2] : vector<4x16x16xf32> to vector<4x16xf32>
    %48 = vector.shape_cast %47 : vector<4x16xf32> to vector<4x16x1xf32>
    %49 = vector.broadcast %48 : vector<4x16x1xf32> to vector<4x16x16xf32>
    %50 = arith.subf %46, %49 : vector<4x16x16xf32>
    %51 = math.exp %50 : vector<4x16x16xf32>
    %cst_18 = arith.constant dense<0.000000e+00> : vector<4x16xf32>
    %52 = vector.multi_reduction <add>, %51, %cst_18 [2] : vector<4x16x16xf32> to vector<4x16xf32>
    %53 = vector.shape_cast %52 : vector<4x16xf32> to vector<4x16x1xf32>
    %54 = tpu.reciprocal %53 {approx = true} : vector<4x16x1xf32> -> vector<4x16x1xf32>
    %55 = vector.broadcast %54 : vector<4x16x1xf32> to vector<4x16x16xf32>
    %56 = arith.mulf %51, %55 : vector<4x16x16xf32>
    %57 = arith.truncf %56 : vector<4x16x16xf32> to vector<4x16x16xbf16>
    %58 = arith.truncf %38 : vector<4x16x16xf32> to vector<4x16x16xbf16>
    "tpu.trace_start"() <{level = 10 : i32, message = "wqk,wkd->wqd"}> : () -> ()
    %cst_19 = arith.constant dense<0.000000e+00> : vector<4x16x16xf32>
    %59 = tpu.matmul %57, %58, %cst_19 {dimension_numbers = #tpu.dot_dimension_numbers<[2], [1], [1], [2], [0, 0, 0, 1, 1, 2], [0], [0]>} : vector<4x16x16xbf16>, vector<4x16x16xbf16>, vector<4x16x16xf32> -> vector<4x16x16xf32>
    "tpu.trace_stop"() : () -> ()
    %60 = vector.extract_strided_slice %31 {offsets = [0, 16], sizes = [64, 16], strides = [1, 1]} : vector<64x96xf32> to vector<64x16xf32>
    %61 = vector.shape_cast %60 : vector<64x16xf32> to vector<4x16x16xf32>
    %62 = vector.extract_strided_slice %31 {offsets = [0, 48], sizes = [64, 16], strides = [1, 1]} : vector<64x96xf32> to vector<64x16xf32>
    %63 = vector.shape_cast %62 : vector<64x16xf32> to vector<4x16x16xf32>
    %64 = vector.extract_strided_slice %31 {offsets = [0, 80], sizes = [64, 16], strides = [1, 1]} : vector<64x96xf32> to vector<64x16xf32>
    %65 = vector.shape_cast %64 : vector<64x16xf32> to vector<4x16x16xf32>
    %66 = arith.truncf %61 : vector<4x16x16xf32> to vector<4x16x16xbf16>
    %67 = arith.truncf %63 : vector<4x16x16xf32> to vector<4x16x16xbf16>
    "tpu.trace_start"() <{level = 10 : i32, message = "wqd,wkd->wqk"}> : () -> ()
    %cst_20 = arith.constant dense<0.000000e+00> : vector<4x16x16xf32>
    %68 = tpu.matmul %66, %67, %cst_20 {dimension_numbers = #tpu.dot_dimension_numbers<[2], [2], [1], [1], [0, 0, 0, 1, 1, 1], [0], [0]>} : vector<4x16x16xbf16>, vector<4x16x16xbf16>, vector<4x16x16xf32> -> vector<4x16x16xf32>
    "tpu.trace_stop"() : () -> ()
    %69 = vector.extract_strided_slice %32 {offsets = [1, 0, 0], sizes = [1, 16, 16], strides = [1, 1, 1]} : vector<2x16x16xf32> to vector<1x16x16xf32>
    %70 = vector.shape_cast %69 : vector<1x16x16xf32> to vector<16x16xf32>
    %71 = vector.shape_cast %70 : vector<16x16xf32> to vector<1x16x16xf32>
    %72 = vector.broadcast %71 : vector<1x16x16xf32> to vector<4x16x16xf32>
    %73 = arith.addf %68, %72 : vector<4x16x16xf32>
    %cst_21 = arith.constant dense<0xFF800000> : vector<4x16xf32>
    %74 = vector.multi_reduction <maximumf>, %73, %cst_21 [2] : vector<4x16x16xf32> to vector<4x16xf32>
    %75 = vector.shape_cast %74 : vector<4x16xf32> to vector<4x16x1xf32>
    %76 = vector.broadcast %75 : vector<4x16x1xf32> to vector<4x16x16xf32>
    %77 = arith.subf %73, %76 : vector<4x16x16xf32>
    %78 = math.exp %77 : vector<4x16x16xf32>
    %cst_22 = arith.constant dense<0.000000e+00> : vector<4x16xf32>
    %79 = vector.multi_reduction <add>, %78, %cst_22 [2] : vector<4x16x16xf32> to vector<4x16xf32>
    %80 = vector.shape_cast %79 : vector<4x16xf32> to vector<4x16x1xf32>
    %81 = tpu.reciprocal %80 {approx = true} : vector<4x16x1xf32> -> vector<4x16x1xf32>
    %82 = vector.broadcast %81 : vector<4x16x1xf32> to vector<4x16x16xf32>
    %83 = arith.mulf %78, %82 : vector<4x16x16xf32>
    %84 = arith.truncf %83 : vector<4x16x16xf32> to vector<4x16x16xbf16>
    %85 = arith.truncf %65 : vector<4x16x16xf32> to vector<4x16x16xbf16>
    "tpu.trace_start"() <{level = 10 : i32, message = "wqk,wkd->wqd"}> : () -> ()
    %cst_23 = arith.constant dense<0.000000e+00> : vector<4x16x16xf32>
    %86 = tpu.matmul %84, %85, %cst_23 {dimension_numbers = #tpu.dot_dimension_numbers<[2], [1], [1], [2], [0, 0, 0, 1, 1, 2], [0], [0]>} : vector<4x16x16xbf16>, vector<4x16x16xbf16>, vector<4x16x16xf32> -> vector<4x16x16xf32>
    "tpu.trace_stop"() : () -> ()
    %87 = tpu.concatenate %59, %86 in 2 : vector<4x16x16xf32>, vector<4x16x16xf32> -> vector<4x16x32xf32>
    %88 = vector.shape_cast %87 : vector<4x16x32xf32> to vector<64x32xf32>
    %89 = arith.truncf %88 : vector<64x32xf32> to vector<64x32xbf16>
    %c0_24 = arith.constant 0 : index
    %c0_25 = arith.constant 0 : index
    %90 = vector.load %arg6[%c0_24, %c0_25] : memref<32x32xbf16, #tpu.memory_space<vmem>>, vector<32x32xbf16>
    %cst_26 = arith.constant dense<0.000000e+00> : vector<64x32xf32>
    %91 = tpu.matmul %89, %90, %cst_26 {dimension_numbers = #tpu.dot_dimension_numbers<[1], [0], [0], [1], [0, 0, 1, 1], [], []>} : vector<64x32xbf16>, vector<32x32xbf16>, vector<64x32xf32> -> vector<64x32xf32>
    %c0_27 = arith.constant 0 : index
    %c0_28 = arith.constant 0 : index
    %92 = vector.load %arg7[%c0_27, %c0_28] : memref<1x32xf32, #tpu.memory_space<vmem>>, vector<1x32xf32>
    %93 = vector.broadcast %92 : vector<1x32xf32> to vector<64x32xf32>
    %94 = arith.addf %91, %93 : vector<64x32xf32>
    %95 = vector.shape_cast %94 : vector<64x32xf32> to vector<4x16x32xf32>
    %96 = arith.truncf %95 : vector<4x16x32xf32> to vector<4x16x32xbf16>
    %c0_29 = arith.constant 0 : index
    %c0_30 = arith.constant 0 : index
    %c0_31 = arith.constant 0 : index
    %97 = vector.load %arg8[%c0_29, %c0_30, %c0_31] : memref<4x16x32xbf16, #tpu.memory_space<vmem>>, vector<4x16x32xbf16>
    tpu.vector_store %arg8[%c0_29, %c0_30, %c0_31], %96 {strides = array<i32>} : memref<4x16x32xbf16, #tpu.memory_space<vmem>>, vector<4x16x32xbf16>,
    return
  }
  func.func @transform_0(%arg0: i32) -> (i32, i32, i32) {
    %c0_i32 = arith.constant 0 : i32
    %c0_i32_0 = arith.constant 0 : i32
    %c0_i32_1 = arith.constant 0 : i32
    return %arg0, %c0_i32, %c0_i32_0 : i32, i32, i32
  }
  func.func @transform_1(%arg0: i32) -> (i32, i32) {
    %c0_i32 = arith.constant 0 : i32
    %c0_i32_0 = arith.constant 0 : i32
    %c0_i32_1 = arith.constant 0 : i32
    return %c0_i32, %c0_i32_0 : i32, i32
  }
  func.func @transform_2(%arg0: i32) -> (i32, i32) {
    %c0_i32 = arith.constant 0 : i32
    %c0_i32_0 = arith.constant 0 : i32
    %c0_i32_1 = arith.constant 0 : i32
    return %c0_i32, %c0_i32_0 : i32, i32
  }
  func.func @transform_3(%arg0: i32) -> (i32, i32) {
    %c0_i32 = arith.constant 0 : i32
    %c0_i32_0 = arith.constant 0 : i32
    %c0_i32_1 = arith.constant 0 : i32
    return %c0_i32, %c0_i32_0 : i32, i32
  }
  func.func @transform_4(%arg0: i32) -> (i32, i32, i32) {
    %c0_i32 = arith.constant 0 : i32
    %c0_i32_0 = arith.constant 0 : i32
    %c0_i32_1 = arith.constant 0 : i32
    %c0_i32_2 = arith.constant 0 : i32
    return %c0_i32, %c0_i32_0, %c0_i32_1 : i32, i32, i32
  }
  func.func @transform_5(%arg0: i32) -> (i32, i32) {
    %c0_i32 = arith.constant 0 : i32
    %c0_i32_0 = arith.constant 0 : i32
    %c0_i32_1 = arith.constant 0 : i32
    return %c0_i32, %c0_i32_0 : i32, i32
  }
  func.func @transform_6(%arg0: i32) -> (i32, i32) {
    %c0_i32 = arith.constant 0 : i32
    %c0_i32_0 = arith.constant 0 : i32
    %c0_i32_1 = arith.constant 0 : i32
    return %c0_i32, %c0_i32_0 : i32, i32
  }
  func.func @transform_7(%arg0: i32) -> (i32, i32, i32) {
    %c0_i32 = arith.constant 0 : i32
    %c0_i32_0 = arith.constant 0 : i32
    %c0_i32_1 = arith.constant 0 : i32
    return %arg0, %c0_i32, %c0_i32_0 : i32, i32, i32
  }
}

</mosaic_0001>

<bundles_post_ra>
// kernel: tpu_custom_call.1
= control target key start
LH: loop header
LB: loop body
LE: loop exit
PB: predicated region body
PF: predicated region fallthrough
CT: control target
= control target key end

     0   :  { %7 = vsyncpa [#allocation3], 0  ;;  %s591_s0 = inlined_call_operand.hbm [shape: f32[16,128], index: 0, kind: input, shape index: {}]   ;;  %s592_s1 = inlined_call_operand.vmem [shape: f32[1,128], index: 1, kind: input, shape index: {}]   ;;  %s593_s2 = inlined_call_operand.hbm [shape: f32[16,128], index: 2, kind: output, shape index: {}]  }
   0x1   :  { %9 = vsyncpa [#allocation3 + $0x1], 0 }
   0x2   :  { %10 = vsyncpa [#allocation4], 0 }
   0x3   :  { %12 = vsyncpa [#allocation4 + $0x1], 0  ;;  %s427_s9 = smov 0   ;;  %s429_s10 = smov 0  }
   0x4   :  { %s431_s11 = smov 0   ;;  %s433_s12 = smov 0  }
   0x5 LB: > { %s448_s13 = sadd.s32 4294967295, %s408_s12   ;;  %s253_s14 = sadd.s32 4294967294, %s408_s12   ;;  %s408_s12 = sphi %s433_s12, %s608_s12   ;;  %s404_s11 = sphi %s431_s11, %s607_s11   ;;  %s400_s10 = sphi %s429_s10, %s606_s10   ;;  %s396_s9 = sphi %s427_s9, %s605_s9  }
   0x6   : > { %s452_s15 = sadd.s32 1, %s408_s12   ;;  %s25_s16 = sadd.s32 1, %s404_s11 }
   0x7   : > { %s22_s17 = ssub.s32 %s408_s12, %s452_s15  ;;  %p32_p0 = scmp.ne.s32.totalorder %s404_s11, %s400_s10 }
   0x8   : > { %p23_p1 = scmp.eq.s32.totalorder %s22_s17, 0  ;;  %p33_p2 = scmp.eq.s32.totalorder %s408_s12, 0 }
   0x9   : > { %p38_p3 = scmp.ne.s32.totalorder %s400_s10, %s396_s9  ;;  %p39_p4 = scmp.eq.s32.totalorder %s448_s13, 0 }
   0xa   : > { %s464_s18 = scalar_select %p23_p1, %s404_s11, %s25_s16  }
   0xb   : > { %p466_p5 = por %p33_p2, %p32_p0  ;;  %p470_p6 = por %p39_p4, %p38_p3 }
   0xc   : > { %p83_p7 = scmp.eq.s32.totalorder %s448_s13, 1  ;;  %p89_p8 = scmp.eq.s32.totalorder %s253_s14, 1 }
   0xd   : > { %p278_p10 = scmp.lt.s32.totalorder %s408_s12, 2  ;;  %s112_s23 = sand.u32 1, %s404_s11  }
   0xe   : > { %p477_p11 = por %p83_p7, %p32_p0  ;;  %p481_p12 = por %p89_p8, %p38_p3 }
   0xf   : > { %s257_s24 = sshll.u32 %s408_s12, 7  ;;  %s256_s25 = sshll.u32 %s112_s23, 3 }
  0x10   : > { %s597_s21 = scalar_select %p477_p11, 1, 0 }
  0x11   : > { %s598_s22 = scalar_select %p481_p12, 1, 0 }
  0x12   : > { %s490_s28 = scalar_lea.hbm %s591_s0, %s257_s24  ;;  %s116_s29 = scalar_lea.vmem [#allocation2], %s256_s25 }
  0x13   : > { %s123_s30 = sshll.u32 %s116_s29, 4  ;;  %p494_p13 = pnand %p278_p10, %p466_p5  ;;  %s498_s30 = int_to_ptr.vmem [resolvable:$true] %s123_s30 }
  0x14   : > { %s113_s4 = scalar_lea.sflag [#allocation3], %s112_s23  ;;  %s312_s5 = scalar_lea.hbm %s490_s28, 128 }
  0x15   : > { %p313_p2 = scmp.ne.s32.totalorder %s490_s28, %s312_s5  ;;  %p314_p3 = pneg %p494_p13 }
  0x16   : > { %s317_s8 = scalar_lea.hbm %s591_s0, 256  ;;  %p318_p5 = scmp.lt.u32.totalorder %s490_s28, %s591_s0 }
  0x17   : > { %p315_p4 = pnand %p314_p3, %p313_p2  ;;  %p319_p8 = scmp.lt.u32.totalorder %s317_s8, %s312_s5 }
  0x18   : > { %p321_p9 = scmp.lt.u32.totalorder %s312_s5, %s490_s28 }
  0x19   : > { %p316_p7 = pneg %p315_p4  ;;  %p320_p10 = por %p319_p8, %p318_p5 }
  0x1b   : > { %p322_p0 = por %p321_p9, %p320_p10 }
  0x1d   : > { %p323_p1 = pnand %p322_p0, %p316_p7 }
  0x1f   : > { %326 = shalt.err (!%p323_p1)
}
  0x20   : > { %s327_s17 = scalar_lea.vmem %s498_s30, 128  ;;  %s410_s19 = smov [#allocation2]  }
  0x21   : > { %p328_p2 = scmp.ne.s32.totalorder %s498_s30, %s327_s17  ;;  %s332_s23 = sshll.u32 %s410_s19, 4  ;;  %s333_s23 = int_to_ptr.vmem [resolvable:$false] %s332_s23 }
  0x22   : > { %s334_s24 = scalar_lea.vmem %s333_s23, 256  ;;  %p335_p11 = scmp.lt.s32.totalorder %s498_s30, %s333_s23 }
  0x23   : > { %p330_p4 = pnand %p328_p2, %p314_p3  ;;  %p336_p5 = scmp.lt.s32.totalorder %s334_s24, %s327_s17 }
  0x25   : > { %p331_p12 = pneg %p330_p4  ;;  %p337_p8 = por %p336_p5, %p335_p11 }
  0x27   : > { %p338_p9 = pnand %p337_p8, %p331_p12 }
  0x29   : > { %341 = shalt.err (!%p338_p9)
}
  0x2a   : > { %273 = dma.hbm_to_vmem [thread:$0]  (!%p494_p13), %s490_s28, 128, %s498_s30, %s113_s4  }
  0x2b   : > { %p600_p0 = scmp.lt.s32.totalorder %s408_s12, 3  ;;  %p601_p1 = scmp.ge.s32.totalorder %s408_s12, 1 }
  0x2d   : > { %p129_p3 = pnand %p601_p1, %p600_p0 }
  0x2e   : > { %s532_s25 = sand.u32 (!%p129_p3), 1, %s400_s10  }
  0x2f   : > { %132 = sbr.rel (%p129_p3) target bundleno = 81 (0x51), region = 28  ;;  %s259_s26 = sshll.u32 (!%p129_p3), %s532_s25, 3 }
  0x30   : > { %s135_s27 = scalar_lea.sflag (!%p129_p3), [#allocation3], %s532_s25  ;;  %s138_s29 = scalar_lea.vmem (!%p129_p3), [#allocation2], %s259_s26 }
  0x36   : > { %387 = dma.done.wait (%p470_p6), %s135_s27, 128  }
  0x37   : > { %389 = vsyncadd (%p470_p6), %s135_s27, 4294967168  ;;  %s158_s28 = scalar_lea.vmem [#allocation5], %s259_s26  ;;  %s263_s3 = sshll.u32 %s448_s13, 7  ;;  %v159_v0 = vld [vmem:[%s138_s29] sm:$0xff] }
  0x38   : > { %s183_s30 = sshll.u32 %s158_s28, 4  ;;  %v261_v1 = vld [vmem:[%s592_s1] ss:$0 sm:$0xff]  ;;  %s549_s20 = scalar_lea.hbm %s593_s2, %s263_s3  ;;  %s544_s30 = int_to_ptr.vmem [resolvable:$true] %s183_s30 }
  0x39   : > { %v167_v2 = vadd.f32 %v261_v1, %v159_v0  ;;  %s170_s8 = scalar_lea.sflag [#allocation4], %s532_s25  ;;  %s342_s14 = scalar_lea.vmem %s544_s30, 128 }
  0x3a   : > { %p343_p6 = scmp.ne.s32.totalorder %s544_s30, %s342_s14  ;;  %p602_p11 = scmp.ne.s32.totalorder %s597_s21, 0 }
  0x3b   : > { %168 = vst [vmem:[%s158_s28] sm:$0xff] %v167_v2  ;;  %s411_s13 = smov [#allocation5]  }
  0x3c   : > { %p344_p12 = pnand %p343_p6, %p602_p11  ;;  %s346_s16 = sshll.u32 %s411_s13, 4  ;;  %s347_s16 = int_to_ptr.vmem [resolvable:$false] %s346_s16 }
  0x3d   : > { %s348_s17 = scalar_lea.vmem %s347_s16, 256  ;;  %p349_p7 = scmp.lt.s32.totalorder %s544_s30, %s347_s16 }
  0x3e   : > { %p345_p13 = pneg %p344_p12  ;;  %p350_p10 = scmp.lt.s32.totalorder %s348_s17, %s342_s14 }
  0x40   : > { %p351_p2 = por %p350_p10, %p349_p7 }
  0x42   : > { %p352_p4 = pnand %p351_p2, %p345_p13 }
  0x44   : > { %355 = shalt.err (!%p352_p4)
}
  0x45   : > { %s356_s19 = scalar_lea.hbm %s549_s20, 128  ;;  %s360_s25 = scalar_lea.hbm %s593_s2, 256 }
  0x46   : > { %p357_p5 = scmp.ne.s32.totalorder %s549_s20, %s356_s19  ;;  %p361_p0 = scmp.lt.u32.totalorder %s549_s20, %s593_s2 }
  0x47   : > { %p362_p1 = scmp.lt.u32.totalorder %s360_s25, %s356_s19  ;;  %p364_p6 = scmp.lt.u32.totalorder %s356_s19, %s549_s20 }
  0x48   : > { %p358_p8 = pnand %p357_p5, %p602_p11 }
  0x49   : > { %p363_p3 = por %p362_p1, %p361_p0 }
  0x4a   : > { %p359_p9 = pneg %p358_p8 }
  0x4b   : > { %p365_p12 = por %p364_p6, %p363_p3 }
  0x4d   : > { %p366_p13 = pnand %p365_p12, %p359_p9 }
  0x4f   : > { %369 = shalt.err (!%p366_p13)
}
  0x50   : > { %268 = dma.vmem_to_hbm [thread:$0]  (%p602_p11), %s544_s30, 128, %s549_s20, %s170_s8  }
  0x51 PF: > { %s195_s29 = sand.u32 1, %s396_s9   ;;  %p603_p7 = scmp.ne.s32.totalorder %s598_s22, 0 }
  0x52   : > { %p604_p10 = scmp.ge.s32.totalorder %s408_s12, 2  ;;  %s196_s28 = scalar_lea.sflag [#allocation4], %s195_s29 }
  0x54   : > { %p275_p2 = pnand %p604_p10, %p603_p7 }
  0x56   : > { %391 = dma.done.wait (!%p275_p2), %s196_s28, 128  }
  0x57   : > { %393 = vsyncadd (!%p275_p2), %s196_s28, 4294967168  ;;  %p15_p4 = scmp.ge.s32.totalorder %s452_s15, 4   ;;  %s605_s9 = smov %s400_s10 }
  0x58   : > { %s606_s10 = smov %s404_s11  ;;  %s607_s11 = smov %s464_s18 }
  0x59   : > { %s608_s12 = smov %s452_s15  ;;  %17 = sbr.rel (!%p15_p4) target bundleno = 5 (0x5), region = 73 }
  0x60   :  { %201 = vsyncpa [#allocation3], 1 }
  0x61   :  { %203 = vsyncpa [#allocation3 + $0x1], 1 }
  0x62   :  { %204 = vsyncpa [#allocation4], 1 }
  0x63   :  { %206 = vsyncpa [#allocation4 + $0x1], 1 }

// kernel: tpu_custom_call.1
= control target key start
LH: loop header
LB: loop body
LE: loop exit
PB: predicated region body
PF: predicated region fallthrough
CT: control target
= control target key end

     0   :  { %12 = vsyncpa [#allocation3], 0  ;;  %s3053_s0 = inlined_call_operand.hbm [shape: bf16[32,16,32], index: 0, kind: input, shape index: {}]   ;;  %s3054_s1 = inlined_call_operand.vmem [shape: f32[1,32], index: 1, kind: input, shape index: {}]   ;;  %s3055_s2 = inlined_call_operand.vmem [shape: f32[1,32], index: 2, kind: input, shape index: {}]   ;;  %s3056_s3 = inlined_call_operand.hbm [shape: bf16[32,96], index: 3, kind: input, shape index: {}]   ;;  %s3057_s4 = inlined_call_operand.hbm [shape: f32[2,16,16], index: 4, kind: input, shape index: {}]   ;;  %s3058_s5 = inlined_call_operand.vmem [shape: bf16[32,32], index: 5, kind: input, shape index: {}]   ;;  %s3059_s6 = inlined_call_operand.vmem [shape: f32[1,32], index: 6, kind: input, shape index: {}]   ;;  %s3060_s7 = inlined_call_operand.hbm [shape: bf16[32,16,32], index: 7, kind: output, shape index: {}]  }
   0x1   :  { %14 = vsyncpa [#allocation3 + $0x1], 0 }
   0x2   :  { %15 = vsyncpa [#allocation6], 0 }
   0x3   :  { %16 = vsyncpa [#allocation4], 0 }
   0x4   :  { %18 = vsyncpa [#allocation4 + $0x1], 0  ;;  %s2501_s24 = smov 0   ;;  %s2503_s25 = smov 0  }
   0x5   :  { %s2505_s26 = smov 0   ;;  %s2507_s27 = smov 0  }
   0x6 LB: > { %s2522_s28 = sadd.s32 4294967295, %s2442_s27   ;;  %s1844_s29 = sadd.s32 4294967294, %s2442_s27   ;;  %s2442_s27 = sphi %s2507_s27, %s3081_s27   ;;  %s2438_s26 = sphi %s2505_s26, %s3080_s26   ;;  %s2434_s25 = sphi %s2503_s25, %s3079_s25   ;;  %s2430_s24 = sphi %s2501_s24, %s3078_s24  }
   0x7   : > { %p44_p0 = scmp.ne.s32.totalorder %s2434_s25, %s2430_s24  ;;  %p3061_p1 = scmp.eq.s32.totalorder %s2522_s28, 0 }
   0x8   : > { %p200_p3 = scmp.eq.s32.totalorder %s1844_s29, 7  ;;  %p1845_p5 = scmp.ge.s32.totalorder %s2442_s27, 1 }
   0x9   : > { %p2531_p4 = por %p3061_p1, %p44_p0  ;;  %p207_p7 = scmp.lt.s32.totalorder %s2442_s27, 9 }
   0xa   : > { %p2536_p6 = por %p200_p3, %p44_p0  ;;  %s2444_s10 = smov [#allocation5]  }
   0xb   : > { %s3065_s30 = scalar_select %p2531_p4, 1, 0 }
   0xc   : > { %s3066_s8 = scalar_select %p2536_p6, 1, 0 }
   0xd   : > { %p2541_p8 = pnand %p1845_p5, %p207_p7  ;;  %s225_s11 = sshll.u32 %s2444_s10, 4  ;;  %s226_s11 = int_to_ptr.vmem [resolvable:$true] %s225_s11 }
   0xe   : > { %s2445_s13 = smov [#allocation7]   ;;  %s2286_s17 = scalar_lea.hbm %s3056_s3, 256 }
   0xf   : > { %s3067_s9 = scalar_select %p2541_p8, 1, 0 }
  0x10   : > { %p2114_p9 = pneg %p2541_p8  ;;  %s238_s14 = sshll.u32 %s2445_s13, 4  ;;  %s2553_s14 = int_to_ptr.vmem [resolvable:$true] %s238_s14 }
  0x11   : > { %p2287_p11 = scmp.ne.s32.totalorder %s3056_s3, %s2286_s17  ;;  %p2293_p3 = scmp.lt.u32.totalorder %s2286_s17, %s3056_s3 }
  0x12   : > { %p2549_p10 = pnand %p2114_p9, %p3061_p1 }
  0x14   : > { %p2288_p12 = pneg %p2549_p10 }
  0x16   : > { %p2289_p13 = pnand %p2288_p12, %p2287_p11 }
  0x18   : > { %p2290_p0 = pneg %p2289_p13 }
  0x1a   : > { %p2295_p5 = pnand %p2293_p3, %p2290_p0 }
  0x1c   : > { %2298 = shalt.err (!%p2295_p5)
}
  0x1d   : > { %s2299_s22 = scalar_lea.vmem %s226_s11, 256  ;;  %p2307_p2 = scmp.lt.s32.totalorder %s226_s11, %s226_s11 }
  0x1e   : > { %p2300_p7 = scmp.ne.s32.totalorder %s226_s11, %s2299_s22  ;;  %p2308_p6 = scmp.lt.s32.totalorder %s2299_s22, %s2299_s22 }
  0x20   : > { %p2302_p9 = pnand %p2300_p7, %p2288_p12  ;;  %p2309_p4 = por %p2308_p6, %p2307_p2 }
  0x22   : > { %p2303_p1 = pneg %p2302_p9 }
  0x24   : > { %p2310_p8 = pnand %p2309_p4, %p2303_p1 }
  0x26   : > { %2313 = shalt.err (!%p2310_p8)
}
  0x27   : > { %s3064_s23 = smov 64   ;;  %s2447_s29 = smov 4  }
  0x28   : > { %2117 = dma.hbm_to_vmem [thread:$0]  (!%p2549_p10), %s3056_s3, 256, %s226_s11, [#allocation6], %s3064_s23, %s3064_s23, %s2447_s29  }
  0x29   : > { %s2314_s17 = scalar_lea.hbm %s3057_s4, 512 }
  0x2a   : > { %p2315_p1 = scmp.ne.s32.totalorder %s3057_s4, %s2314_s17  ;;  %p2321_p6 = scmp.lt.u32.totalorder %s2314_s17, %s3057_s4 }
  0x2c   : > { %p2317_p2 = pnand %p2315_p1, %p2288_p12 }
  0x2e   : > { %p2318_p4 = pneg %p2317_p2 }
  0x30   : > { %p2323_p8 = pnand %p2321_p6, %p2318_p4 }
  0x32   : > { %2326 = shalt.err (!%p2323_p8)
}
  0x33   : > { %s2327_s11 = scalar_lea.vmem %s2553_s14, 512  ;;  %p2335_p3 = scmp.lt.s32.totalorder %s2553_s14, %s2553_s14 }
  0x34   : > { %p2328_p11 = scmp.ne.s32.totalorder %s2553_s14, %s2327_s11  ;;  %p2336_p5 = scmp.lt.s32.totalorder %s2327_s11, %s2327_s11 }
  0x36   : > { %p2330_p13 = pnand %p2328_p11, %p2288_p12  ;;  %p2337_p7 = por %p2336_p5, %p2335_p3 }
  0x38   : > { %p2331_p0 = pneg %p2330_p13 }
  0x3a   : > { %p2338_p9 = pnand %p2337_p7, %p2331_p0 }
  0x3c   : > { %2341 = shalt.err (!%p2338_p9)
}
  0x3d   : > { %s2448_s22 = smov 128   ;;  %s2449_s10 = smov 8  }
  0x3e   : > { %2120 = dma.hbm_to_vmem [thread:$0]  (!%p2549_p10), %s3057_s4, 512, %s2553_s14, [#allocation6], %s2448_s22, %s2448_s22, %s2449_s10  }
  0x3f   : > { %s2606_s16 = sadd.s32 1, %s2442_s27   ;;  %s31_s18 = sadd.s32 1, %s2438_s26 }
  0x40   : > { %s28_s17 = ssub.s32 %s2442_s27, %s2606_s16  ;;  %p38_p1 = scmp.ne.s32.totalorder %s2438_s26, %s2434_s25 }
  0x41   : > { %p29_p12 = scmp.eq.s32.totalorder %s28_s17, 0  ;;  %p39_p2 = scmp.eq.s32.totalorder %s2442_s27, 0 }
  0x42   : > { %p3069_p6 = scmp.eq.s32.totalorder %s2522_s28, 7  ;;  %p2131_p11 = scmp.lt.s32.totalorder %s2442_s27, 8 }
  0x43   : > { %s2615_s19 = scalar_select %p29_p12, %s2438_s26, %s31_s18  }
  0x44   : > { %p40_p4 = por %p39_p2, %p38_p1  ;;  %p2619_p8 = por %p3069_p6, %p38_p1 }
  0x45   : > { %s258_s12 = sand.u32 1, %s2438_s26   ;;  %s1904_s14 = sshll.u32 %s2442_s27, 9 }
  0x46   : > { %s1849_s21 = sshll.u32 %s258_s12, 5  ;;  %s2629_s10 = scalar_lea.hbm %s3053_s0, %s1904_s14 }
  0x47   : > { %s262_s13 = scalar_lea.vmem [#allocation2], %s1849_s21  ;;  %p2633_p10 = pnand %p2131_p11, %p40_p4 }
  0x48   : > { %s270_s15 = sshll.u32 %s262_s13, 4  ;;  %s2637_s18 = scalar_lea.sflag [#allocation3], %s258_s12  ;;  %s2631_s15 = int_to_ptr.vmem [resolvable:$true] %s270_s15 }
  0x49   : > { %s2342_s23 = scalar_lea.hbm %s2629_s10, 512  ;;  %p2344_p0 = pneg %p2633_p10 }
  0x4a   : > { %p2343_p13 = scmp.ne.s32.totalorder %s2629_s10, %s2342_s23  ;;  %s2347_s11 = scalar_lea.hbm %s3053_s0, 4096 }
  0x4b   : > { %p2348_p7 = scmp.lt.u32.totalorder %s2629_s10, %s3053_s0  ;;  %p2349_p9 = scmp.lt.u32.totalorder %s2347_s11, %s2342_s23 }
  0x4c   : > { %p2345_p3 = pnand %p2344_p0, %p2343_p13  ;;  %p2351_p1 = scmp.lt.u32.totalorder %s2342_s23, %s2629_s10 }
  0x4d   : > { %p2350_p12 = por %p2349_p9, %p2348_p7 }
  0x4e   : > { %p2346_p5 = pneg %p2345_p3 }
  0x4f   : > { %p2352_p2 = por %p2351_p1, %p2350_p12 }
  0x51   : > { %p2353_p4 = pnand %p2352_p2, %p2346_p5 }
  0x53   : > { %2356 = shalt.err (!%p2353_p4)
}
  0x54   : > { %s2357_s12 = scalar_lea.vmem %s2631_s15, 512  ;;  %s2450_s21 = smov [#allocation2]  }
  0x55   : > { %p2358_p6 = scmp.ne.s32.totalorder %s2631_s15, %s2357_s12  ;;  %s2362_s14 = sshll.u32 %s2450_s21, 4  ;;  %s2363_s14 = int_to_ptr.vmem [resolvable:$false] %s2362_s14 }
  0x56   : > { %s2364_s22 = scalar_lea.vmem %s2363_s14, 1024  ;;  %p2365_p3 = scmp.lt.s32.totalorder %s2631_s15, %s2363_s14 }
  0x57   : > { %p2360_p11 = pnand %p2358_p6, %p2344_p0  ;;  %p2366_p7 = scmp.lt.s32.totalorder %s2364_s22, %s2357_s12 }
  0x59   : > { %p2361_p13 = pneg %p2360_p11  ;;  %p2367_p9 = por %p2366_p7, %p2365_p3 }
  0x5b   : > { %p2368_p12 = pnand %p2367_p9, %p2361_p13 }
  0x5d   : > { %2371 = shalt.err (!%p2368_p12)
}
  0x5e   : > { %s3072_s23 = smov 64   ;;  %p3073_p0 = scmp.ne.s32.totalorder %s3067_s9, 0 }
  0x5f   : > { %2124 = dma.hbm_to_vmem [thread:$0]  (!%p2633_p10), %s2629_s10, 512, %s2631_s15, %s2637_s18, %s3072_s23, %s3072_s23, %s2447_s29  }
  0x60   : > { %282 = sbr.rel (%p3073_p0) target bundleno = 2600 (0xa28), region = 48  ;;  %s2671_s11 = sand.u32 (!%p3073_p0), 1, %s2434_s25  }
  0x61   : > { %s1854_s13 = sshll.u32 (!%p3073_p0), %s2671_s11, 5  ;;  %s285_s12 = scalar_lea.sflag (!%p3073_p0), [#allocation3], %s2671_s11 }
  0x62   : > { %s288_s17 = scalar_lea.vmem (!%p3073_p0), [#allocation2], %s1854_s13  ;;  %p3074_p5 = scmp.ne.s32.totalorder (!%p3073_p0), %s3065_s30, 0 }
  0x67   : > { %2417 = dma.done.wait (%p3074_p5), %s285_s12, 512  }
  0x68   : > { %2419 = vsyncadd (%p3074_p5), %s285_s12, 4294966784  ;;  %p3075_p10 = scmp.eq.s32.totalorder %s2522_s28, 0 }
  0x6a   : > { %2421 = dma.done.wait (%p3075_p10), [#allocation6], 768   ;;  %p3076_p1 = pmov %p3075_p10 }
  0x6b   : > { %v1916_v0 = vld [vmem:[%s288_s17] sm:$0xff]   ;;  %vm346_vm0 = vcmask 261120   ;;  %v1931_v1 = vld [vmem:[%s288_s17 + $0x8] sm:$0xff]   ;;  %v1932_v6 = vld [vmem:[%s288_s17 + $0x10] sm:$0xff]   ;;  %vm2452_vm1 = vmmov 0   ;;  %s2453_s15 = smov 96  }
  0x6c   : > { %2423 = vsyncadd (%p3076_p1), [#allocation6], 4294966528  ;;  %v1917_v2 = vunpack.c.l.bf16 %v1916_v0  ;;  %v1921_v3 = vunpack.c.l.bf16 %v1931_v1  ;;  %v1918_v4 = vunpack.c.h.bf16 %v1916_v0  ;;  %v1922_v5 = vunpack.c.h.bf16 %v1931_v1  ;;  %v1933_v13 = vld [vmem:[%s288_s17 + $0x18] sm:$0xff]   ;;  %v2202_v60 = vld [vmem:[#allocation5] sm:$0xff]   ;;  %s2454_s18 = smov 64   ;;  %s2455_s21 = smov 80  }
  0x6d   : > { %v1925_v11 = vunpack.c.l.bf16 %v1932_v6  ;;  %v1926_v12 = vunpack.c.h.bf16 %v1932_v6  ;;  %v1929_v16 = vunpack.c.l.bf16 %v1933_v13  ;;  %v1930_v17 = vunpack.c.h.bf16 %v1933_v13  ;;  %1978 = vmatprep.subr.bf16.mxu0 %v2202_v60  ;;  %2098 = vmatprep.subr.bf16.mxu1 %v2202_v60  ;;  %v2203_v61 = vld [vmem:[#allocation5 + $0x8] sm:$0xff]   ;;  %s2456_s14 = smov 112   ;;  %s2457_s22 = smov 48  }
  0x6e   : > { %v347_v7 = vsel %vm346_vm0, %v1917_v2, 0.0  ;;  %v353_v8 = vsel %vm346_vm0, %v1921_v3, 0.0  ;;  %v350_v9 = vsel %vm346_vm0, %v1918_v4, 0.0  ;;  %v356_v10 = vsel %vm346_vm0, %v1922_v5, 0.0  ;;  %1979 = vmatpush3.bf16.msra.mxu0 %v2202_v60  ;;  %2100 = vmatpush3.bf16.msra.mxu1 %v2202_v60  ;;  %s2458_s9 = smov 16   ;;  %s2459_s17 = smov [#allocation8]  }
  0x6f   : > { %348 = vadd.xlane.f32.xlu0 %v347_v7  ;;  %354 = vadd.xlane.f32.xlu1 %v353_v8  ;;  %v359_v14 = vsel %vm346_vm0, %v1925_v11, 0.0  ;;  %v362_v15 = vsel %vm346_vm0, %v1926_v12, 0.0  ;;  %v365_v18 = vsel %vm346_vm0, %v1929_v16, 0.0  ;;  %v368_v19 = vsel %vm346_vm0, %v1930_v17, 0.0  ;;  %s2376_s30 = sshll.u32 %s2459_s17, 4  ;;  %s2377_s30 = int_to_ptr.vmem [resolvable:$false] %s2376_s30 }
  0x70   : > { %1980 = vmatprep.subr.bf16.mxu0 %v2203_v61  ;;  %2099 = vmatprep.subr.bf16.mxu1 %v2203_v61  ;;  %vm590_vm2 = vcmask 130048   ;;  %vm1728_vm3 = vcmask 257024  }
  0x72   : > { %1981 = vmatpush3.bf16.msra.mxu0 %v2203_v61  ;;  %2101 = vmatpush3.bf16.msra.mxu1 %v2203_v61 }
  0x73   : > { %351 = vadd.xlane.f32.xlu0 %v350_v9  ;;  %357 = vadd.xlane.f32.xlu1 %v356_v10 }
  0x77   : > { %360 = vadd.xlane.f32.xlu0 %v359_v14  ;;  %363 = vadd.xlane.f32.xlu1 %v362_v15 }
  0x7b   : > { %366 = vadd.xlane.f32.xlu0 %v365_v18  ;;  %369 = vadd.xlane.f32.xlu1 %v368_v19 }
  0xfc   : > { %v349_v20 = vpop.xlane.xlu0 %348  ;;  %v355_v21 = vpop.xlane.xlu1 %354 }
  0xfd   : > { %v372_v22 = vmul.f32 0.03125, %v349_v20  ;;  %v374_v23 = vmul.f32 0.03125, %v355_v21 }
  0xff   : > { %v2693_v24 = vsub.f32 %v1917_v2, %v372_v22  ;;  %v2695_v25 = vsub.f32 %v1921_v3, %v374_v23  ;;  %v1858_v23 = vld [vmem:[%s3054_s1] ss:$0 sm:$0xff] }
 0x100   : > { %v352_v26 = vpop.xlane.xlu0 %351  ;;  %v358_v27 = vpop.xlane.xlu1 %357 }
 0x101   : > { %v373_v28 = vmul.f32 0.03125, %v352_v26  ;;  %v375_v29 = vmul.f32 0.03125, %v358_v27  ;;  %v388_v30 = vmul.f32 %v2693_v24, %v2693_v24  ;;  %v390_v31 = vmul.f32 %v2695_v25, %v2695_v25 }
 0x103   : > { %v2701_v32 = vsub.f32 %v1918_v4, %v373_v28  ;;  %v2703_v33 = vsub.f32 %v1922_v5, %v375_v29  ;;  %v396_v34 = vsel %vm346_vm0, %v388_v30, 0.0  ;;  %v402_v37 = vsel %vm346_vm0, %v390_v31, 0.0 }
 0x104   : > { %397 = vadd.xlane.f32.xlu0 %v396_v34  ;;  %v361_v35 = vpop.xlane.xlu0 %360  ;;  %v364_v36 = vpop.xlane.xlu1 %363 }
 0x105   : > { %v376_v38 = vmul.f32 0.03125, %v361_v35  ;;  %v377_v39 = vmul.f32 0.03125, %v364_v36  ;;  %v389_v40 = vmul.f32 %v2701_v32, %v2701_v32  ;;  %v391_v41 = vmul.f32 %v2703_v33, %v2703_v33 }
 0x107   : > { %v2711_v42 = vsub.f32 %v1925_v11, %v376_v38  ;;  %v2713_v43 = vsub.f32 %v1926_v12, %v377_v39  ;;  %v399_v44 = vsel %vm346_vm0, %v389_v40, 0.0  ;;  %v405_v47 = vsel %vm346_vm0, %v391_v41, 0.0 }
 0x108   : > { %403 = vadd.xlane.f32.xlu0 %v402_v37  ;;  %400 = vadd.xlane.f32.xlu1 %v399_v44  ;;  %v367_v45 = vpop.xlane.xlu0 %366  ;;  %v370_v46 = vpop.xlane.xlu1 %369 }
 0x109   : > { %v378_v48 = vmul.f32 0.03125, %v367_v45  ;;  %v379_v49 = vmul.f32 0.03125, %v370_v46  ;;  %v392_v50 = vmul.f32 %v2711_v42, %v2711_v42  ;;  %v393_v51 = vmul.f32 %v2713_v43, %v2713_v43 }
 0x10b   : > { %v2721_v52 = vsub.f32 %v1929_v16, %v378_v48  ;;  %v2723_v53 = vsub.f32 %v1930_v17, %v379_v49  ;;  %v408_v54 = vsel %vm346_vm0, %v392_v50, 0.0  ;;  %v411_v55 = vsel %vm346_vm0, %v393_v51, 0.0 }
 0x10c   : > { %406 = vadd.xlane.f32.xlu1 %v405_v47  ;;  %409 = vadd.xlane.f32.xlu0 %v408_v54 }
 0x10d   : > { %v394_v56 = vmul.f32 %v2721_v52, %v2721_v52  ;;  %v395_v57 = vmul.f32 %v2723_v53, %v2723_v53 }
 0x10f   : > { %v414_v58 = vsel %vm346_vm0, %v394_v56, 0.0  ;;  %v417_v59 = vsel %vm346_vm0, %v395_v57, 0.0 }
 0x110   : > { %412 = vadd.xlane.f32.xlu1 %v411_v55  ;;  %415 = vadd.xlane.f32.xlu0 %v414_v58 }
 0x114   : > { %418 = vadd.xlane.f32.xlu1 %v417_v59 }
 0x191   : > { %v398_v62 = vpop.xlane.xlu0 %397 }
 0x192   : > { %v420_v63 = vmul.f32 0.03125, %v398_v62 }
 0x194   : > { %v428_v0 = vadd.f32 1e-05, %v420_v63 }
 0x195   : > { %v401_v1 = vpop.xlane.xlu1 %400  ;;  %v404_v2 = vpop.xlane.xlu0 %403 }
 0x196   : > { %2206 = vrsqrt.f32 %v428_v0  ;;  %v421_v3 = vmul.f32 0.03125, %v401_v1  ;;  %v422_v4 = vmul.f32 0.03125, %v404_v2 }
 0x198   : > { %v429_v5 = vadd.f32 1e-05, %v421_v3  ;;  %v430_v6 = vadd.f32 1e-05, %v422_v4 }
 0x199   : > { %v407_v7 = vpop.xlane.xlu1 %406  ;;  %v410_v8 = vpop.xlane.xlu0 %409 }
 0x19a   : > { %2208 = vrsqrt.f32 %v429_v5  ;;  %v423_v9 = vmul.f32 0.03125, %v407_v7  ;;  %v424_v10 = vmul.f32 0.03125, %v410_v8 }
 0x19b   : > { %2210 = vrsqrt.f32 %v430_v6 }
 0x19c   : > { %v431_v11 = vadd.f32 1e-05, %v423_v9  ;;  %v432_v12 = vadd.f32 1e-05, %v424_v10 }
 0x19d   : > { %v413_v13 = vpop.xlane.xlu1 %412  ;;  %v416_v14 = vpop.xlane.xlu0 %415 }
 0x19e   : > { %2212 = vrsqrt.f32 %v431_v11  ;;  %v425_v15 = vmul.f32 0.03125, %v413_v13  ;;  %v426_v16 = vmul.f32 0.03125, %v416_v14 }
 0x19f   : > { %2214 = vrsqrt.f32 %v432_v12 }
 0x1a0   : > { %v2207_v17 = vpop.eup %2206  ;;  %v433_v18 = vadd.f32 1e-05, %v425_v15  ;;  %v434_v19 = vadd.f32 1e-05, %v426_v16 }
 0x1a1   : > { %v419_v20 = vpop.xlane.xlu1 %418  ;;  %v444_v21 = vmul.f32 %v2207_v17, %v2693_v24  ;;  %v1859_v24 = vld [vmem:[%s3055_s2] ss:$0 sm:$0xff]  ;;  %v579_v17 = vld [vmem:[#allocation7] sm:$0xff] }
 0x1a2   : > { %2216 = vrsqrt.f32 %v433_v18  ;;  %v427_v22 = vmul.f32 0.03125, %v419_v20 }
 0x1a3   : > { %2218 = vrsqrt.f32 %v434_v19  ;;  %v459_v30 = vmul.f32 %v1858_v23, %v444_v21  ;;  %v580_v19 = vld [vmem:[#allocation7 + $0x8] sm:$0xff] }
 0x1a4   : > { %v2209_v26 = vpop.eup %2208  ;;  %v435_v27 = vadd.f32 1e-05, %v427_v22 }
 0x1a5   : > { %v2211_v28 = vpop.eup %2210  ;;  %v445_v29 = vmul.f32 %v2209_v26, %v2701_v32  ;;  %v474_v38 = vadd.f32 %v1859_v24, %v459_v30 }
 0x1a6   : > { %v446_v31 = vmul.f32 %v2211_v28, %v2695_v25  ;;  %2220 = vrsqrt.f32 %v435_v27 }
 0x1a7   : > { %v460_v34 = vmul.f32 %v1858_v23, %v445_v29 }
 0x1a8   : > { %v2213_v35 = vpop.eup %2212  ;;  %v461_v40 = vmul.f32 %v1858_v23, %v446_v31 }
 0x1a9   : > { %v2215_v36 = vpop.eup %2214  ;;  %v447_v37 = vmul.f32 %v2213_v35, %v2703_v33  ;;  %v475_v39 = vadd.f32 %v1859_v24, %v460_v34 }
 0x1aa   : > { %v448_v41 = vmul.f32 %v2215_v36, %v2711_v42  ;;  %v476_v25 = vadd.f32 %v1859_v24, %v461_v40 }
 0x1ab   : > { %v482_v44 = vpack.c.bf16 %v475_v39, %v474_v38  ;;  %v462_v32 = vmul.f32 %v1858_v23, %v447_v37 }
 0x1ac   : > { %v2217_v45 = vpop.eup %2216  ;;  %v463_v49 = vmul.f32 %v1858_v23, %v448_v41 }
 0x1ad   : > { %v2219_v46 = vpop.eup %2218  ;;  %1982 = vmatprep.mubr.msk.bf16.mxu0 %vm346_vm0, %v482_v44  ;;  %v477_v47 = vadd.f32 %v1859_v24, %v462_v32  ;;  %v449_v48 = vmul.f32 %v2217_v45, %v2713_v43 }
 0x1ae   : > { %v450_v50 = vmul.f32 %v2219_v46, %v2721_v52  ;;  %v478_v42 = vadd.f32 %v1859_v24, %v463_v49  ;;  %v2451_v52 = vmov 0.0  }
 0x1af   : > { %v483_v51 = vpack.c.bf16 %v477_v47, %v476_v25  ;;  %v464_v33 = vmul.f32 %v1858_v23, %v449_v48  ;;  %1990 = vmatprep.subr.bf16.mxu1 %v2451_v52  ;;  %2002 = vmatprep.subr.bf16.mxu0 %v2451_v52 }
 0x1b0   : > { %v2221_v54 = vpop.eup %2220  ;;  %v465_v57 = vmul.f32 %v1858_v23, %v450_v50 }
 0x1b1   : > { %v451_v55 = vmul.f32 %v2221_v54, %v2723_v53  ;;  %1983 = vmatmul.mubr.msk.bf16.vlgmr.msra.gmra.mrb[0].mxu0 %vm346_vm0, %v483_v51  ;;  %v479_v56 = vadd.f32 %v1859_v24, %v464_v33 }
 0x1b2   : > { %v480_v60 = vadd.f32 %v1859_v24, %v465_v57  ;;  %2004 = vmatprep.mubr.msk.bf16.mxu0 %vm2452_vm1, %v2451_v52 }
 0x1b3   : > { %v484_v58 = vpack.c.bf16 %v479_v56, %v478_v42  ;;  %v466_v59 = vmul.f32 %v1858_v23, %v451_v55 }
 0x1b5   : > { %1986 = vmatprep.mubr.msk.bf16.mxu1 %vm346_vm0, %v484_v58  ;;  %v481_v61 = vadd.f32 %v1859_v24, %v466_v59 }
 0x1b7   : > { %v485_v43 = vpack.c.bf16 %v481_v61, %v480_v60 }
 0x1b9   : > { %1987 = vmatmul.mubr.msk.bf16.vlgmr.msra.gmra.mrb[0].mxu1 %vm346_vm0, %v485_v43 }
 0x1ba   : > { %1992 = vmatprep.mubr.msk.bf16.mxu1 %vm2452_vm1, %v2451_v52 }
 0x284   : > { %v1984_v53 = vpop.f32.mrb[0].mxu0 }
 0x285   : > { %v548_v62 = vpop.f32.mrb[1].mxu0 }
 0x286   : > { %v1985_v63 = vpop.f32.mrb[2].mxu0 }
 0x287   : > { %v2757_v0 = vpack.c.bf16 %v1985_v63, %v1984_v53  ;;  %v551_v1 = vpop.f32.mrb[3].mxu0 }
 0x288   : > { %v2759_v2 = vpack.c.bf16 %v551_v1, %v548_v62 }
 0x289   : > { %639 = vrot.lane.b32.xlu1 %v2757_v0, %s2453_s15 }
 0x28a   : > { %588 = vrot.lane.b32.xlu0 %v2759_v2, %s2453_s15 }
 0x28c   : > { %v1988_v3 = vpop.f32.mrb[0].mxu1 }
 0x28d   : > { %v564_v4 = vpop.f32.mrb[1].mxu1 }
 0x28e   : > { %v1989_v5 = vpop.f32.mrb[2].mxu1 }
 0x28f   : > { %v2763_v6 = vpack.c.bf16 %v1989_v5, %v1988_v3  ;;  %v567_v7 = vpop.f32.mrb[3].mxu1 }
 0x290   : > { %v2765_v8 = vpack.c.bf16 %v567_v7, %v564_v4 }
 0x292   : > { %689 = vrot.lane.b32.xlu1 %v2765_v8, %s2453_s15 }
 0x296   : > { %739 = vrot.lane.b32.xlu1 %v2763_v6, %s2453_s15  ;;  %s326_s15 = scalar_lea.vmem [#allocation8], %s1854_s13 }
 0x297   : > { %s1752_s13 = sshll.u32 %s326_s15, 4  ;;  %s3006_s13 = int_to_ptr.vmem [resolvable:$true] %s1752_s13 }
 0x298   : > { %s2372_s12 = scalar_lea.vmem %s3006_s13, 512  ;;  %p2379_p11 = scmp.lt.s32.totalorder %s3006_s13, %s2377_s30 }
 0x299   : > { %p2373_p2 = scmp.ne.s32.totalorder %s3006_s13, %s2372_s12 }
 0x29b   : > { %p2374_p4 = pnand %p2373_p2, %p2619_p8 }
 0x29d   : > { %p2375_p6 = pneg %p2374_p4 }
 0x2fb   : > { %v640_v11 = vpop.permute.xlu1 %639 }
 0x2fc   : > { %v589_v9 = vpop.permute.xlu0 %588  ;;  %v645_v13 = vsel %vm590_vm2, %v640_v11, 0 }
 0x2fd   : > { %v595_v10 = vsel %vm590_vm2, %v589_v9, 0 }
 0x2fe   : > { %1991 = vmatpush3.bf16.xpose.msra.mxu1 %v595_v10 }
 0x2ff   : > { %1996 = vmatprep.subr.bf16.mxu1 %v2451_v52 }
 0x304   : > { %v690_v12 = vpop.permute.xlu1 %689 }
 0x305   : > { %v695_v14 = vsel %vm590_vm2, %v690_v12, 0  ;;  %1993 = vmatmul.mubr.msk.bf16.vlgmr.msra.gmra.mrb[4].mxu1 %vm590_vm2, %v2759_v2 }
 0x306   : > { %1997 = vmatpush3.bf16.xpose.msra.mxu1 %v645_v13  ;;  %2003 = vmatpush3.bf16.xpose.msra.mxu0 %v695_v14 }
 0x307   : > { %1998 = vmatprep.mubr.msk.bf16.mxu1 %vm2452_vm1, %v2451_v52  ;;  %2008 = vmatprep.subr.bf16.mxu1 %v2451_v52 }
 0x308   : > { %2014 = vmatprep.subr.bf16.mxu0 %v2451_v52  ;;  %v740_v15 = vpop.permute.xlu1 %739 }
 0x309   : > { %v745_v16 = vsel %vm590_vm2, %v740_v15, 0 }
 0x30d   : > { %1999 = vmatmul.mubr.msk.bf16.vlgmr.msra.gmra.mrb[8].mxu1 %vm590_vm2, %v2757_v0  ;;  %2005 = vmatmul.mubr.msk.bf16.vlgmr.msra.gmra.mrb[4].mxu0 %vm590_vm2, %v2765_v8 }
 0x30e   : > { %2009 = vmatpush3.bf16.xpose.msra.mxu1 %v745_v16  ;;  %2010 = vmatprep.mubr.msk.bf16.mxu1 %vm2452_vm1, %v2451_v52 }
 0x30f   : > { %2020 = vmatprep.subr.bf16.mxu1 %v2451_v52  ;;  %2016 = vmatprep.mubr.msk.bf16.mxu0 %vm2452_vm1, %v2451_v52 }
 0x315   : > { %2011 = vmatmul.mubr.msk.bf16.vlgmr.msra.gmra.mrb[12].mxu1 %vm590_vm2, %v2763_v6 }
 0x316   : > { %2022 = vmatprep.mubr.msk.bf16.mxu1 %vm2452_vm1, %v2451_v52 }
 0x3d8   : > { %v631_v18 = vpop.f32.mrb[4].mxu1 }
 0x3d9   : > { %v632_v20 = vadd.f32 %v631_v18, %v579_v17  ;;  %v1994_v21 = vpop.f32.mrb[5].mxu1 }
 0x3da   : > { %v634_v22 = vpop.f32.mrb[6].mxu1 }
 0x3db   : > { %v635_v23 = vadd.f32 %v634_v22, %v580_v19  ;;  %v1995_v26 = vpop.f32.mrb[7].mxu1  ;;  %v788_v27 = vsel %vm590_vm2, %v632_v20, -inf }
 0x3dc   : > { %789 = vmax.xlane.f32.xlu0 %v788_v27 }
 0x3dd   : > { %v791_v28 = vsel %vm590_vm2, %v635_v23, -inf }
 0x3de   : > { %792 = vmax.xlane.f32.xlu1 %v791_v28 }
 0x3e0   : > { %v681_v29 = vpop.f32.mrb[8].mxu1  ;;  %v731_v30 = vpop.f32.mrb[4].mxu0 }
 0x3e1   : > { %v682_v31 = vadd.f32 %v681_v29, %v579_v17  ;;  %v2000_v24 = vpop.f32.mrb[9].mxu1  ;;  %v2006_v34 = vpop.f32.mrb[5].mxu0  ;;  %v732_v32 = vadd.f32 %v731_v30, %v579_v17 }
 0x3e2   : > { %v684_v35 = vpop.f32.mrb[10].mxu1  ;;  %v734_v36 = vpop.f32.mrb[6].mxu0 }
 0x3e3   : > { %v2795_v37 = vadd.f32 %v684_v35, %v580_v19  ;;  %v735_v38 = vadd.f32 %v734_v36, %v580_v19  ;;  %v2001_v39 = vpop.f32.mrb[11].mxu1  ;;  %v2007_v40 = vpop.f32.mrb[7].mxu0  ;;  %v794_v41 = vsel %vm590_vm2, %v682_v31, -inf  ;;  %v800_v51 = vsel %vm590_vm2, %v732_v32, -inf }
 0x3e4   : > { %795 = vmax.xlane.f32.xlu0 %v794_v41 }
 0x3e5   : > { %v803_v44 = vsel %vm590_vm2, %v735_v38, -inf  ;;  %v797_v45 = vsel %vm590_vm2, %v2795_v37, -inf }
 0x3e6   : > { %804 = vmax.xlane.f32.xlu1 %v803_v44 }
 0x3e8   : > { %798 = vmax.xlane.f32.xlu0 %v797_v45  ;;  %v781_v46 = vpop.f32.mrb[12].mxu1 }
 0x3e9   : > { %v2012_v25 = vpop.f32.mrb[13].mxu1  ;;  %v782_v48 = vadd.f32 %v781_v46, %v579_v17 }
 0x3ea   : > { %v784_v47 = vpop.f32.mrb[14].mxu1 }
 0x3eb   : > { %v2801_v49 = vadd.f32 %v784_v47, %v580_v19  ;;  %v2013_v50 = vpop.f32.mrb[15].mxu1  ;;  %v806_v54 = vsel %vm590_vm2, %v782_v48, -inf }
 0x3ec   : > { %801 = vmax.xlane.f32.xlu0 %v800_v51 }
 0x3ed   : > { %v809_v33 = vsel %vm590_vm2, %v2801_v49, -inf }
 0x3ee   : > { %810 = vmax.xlane.f32.xlu1 %v809_v33 }
 0x3f0   : > { %807 = vmax.xlane.f32.xlu0 %v806_v54 }
 0x469   : > { %v790_v55 = vpop.xlane.xlu0 %789 }
 0x46a   : > { %v812_v42 = vsub.f32 %v632_v20, %v790_v55 }
 0x46b   : > { %v793_v56 = vpop.xlane.xlu1 %792 }
 0x46c   : > { %v820_v57 = vmul.f32 1.442695, %v812_v42  ;;  %v813_v58 = vsub.f32 %v635_v23, %v793_v56 }
 0x46e   : > { %2222 = vpow2.f32 %v820_v57  ;;  %v822_v59 = vmul.f32 1.442695, %v813_v58 }
 0x470   : > { %2224 = vpow2.f32 %v822_v59 }
 0x471   : > { %v796_v60 = vpop.xlane.xlu0 %795 }
 0x472   : > { %v814_v1 = vsub.f32 %v682_v31, %v796_v60 }
 0x473   : > { %v805_v61 = vpop.xlane.xlu1 %804 }
 0x474   : > { %v817_v43 = vsub.f32 %v735_v38, %v805_v61  ;;  %v824_v10 = vmul.f32 1.442695, %v814_v1 }
 0x475   : > { %v799_v53 = vpop.xlane.xlu0 %798 }
 0x476   : > { %v830_v62 = vmul.f32 1.442695, %v817_v43  ;;  %v815_v19 = vsub.f32 %v2795_v37, %v799_v53 }
 0x478   : > { %v2807_v63 = vpop.eup %2222  ;;  %2226 = vpow2.f32 %v830_v62  ;;  %v826_v21 = vmul.f32 1.442695, %v815_v19 }
 0x479   : > { %v802_v3 = vpop.xlane.xlu0 %801  ;;  %v836_v4 = vsel %vm590_vm2, %v2807_v63, 0.0 }
 0x47a   : > { %v2811_v5 = vpop.eup %2224  ;;  %v816_v7 = vsub.f32 %v732_v32, %v802_v3  ;;  %837 = vadd.xlane.f32.xlu0 %v836_v4 }
 0x47b   : > { %v839_v9 = vsel %vm590_vm2, %v2811_v5, 0.0  ;;  %v811_v29 = vpop.xlane.xlu1 %810 }
 0x47c   : > { %v828_v11 = vmul.f32 1.442695, %v816_v7  ;;  %840 = vadd.xlane.f32.xlu1 %v839_v9  ;;  %v819_v30 = vsub.f32 %v2801_v49, %v811_v29  ;;  %v582_v29 = vld [vmem:[#allocation7 + $0x18] sm:$0xff] }
 0x47d   : > { %v808_v18 = vpop.xlane.xlu0 %807 }
 0x47e   : > { %2228 = vpow2.f32 %v828_v11  ;;  %v818_v20 = vsub.f32 %v782_v48, %v808_v18  ;;  %v834_v31 = vmul.f32 1.442695, %v819_v30 }
 0x47f   : > { %2230 = vpow2.f32 %v824_v10 }
 0x480   : > { %v832_v22 = vmul.f32 1.442695, %v818_v20  ;;  %2232 = vpow2.f32 %v826_v21 }
 0x482   : > { %v2815_v12 = vpop.eup %2226  ;;  %2234 = vpow2.f32 %v832_v22 }
 0x483   : > { %v851_v13 = vsel %vm590_vm2, %v2815_v12, 0.0  ;;  %2236 = vpow2.f32 %v834_v31 }
 0x484   : > { %852 = vadd.xlane.f32.xlu1 %v851_v13 }
 0x488   : > { %v2819_v14 = vpop.eup %2228 }
 0x489   : > { %v848_v15 = vsel %vm590_vm2, %v2819_v14, 0.0  ;;  %v2823_v16 = vpop.eup %2230 }
 0x48a   : > { %849 = vadd.xlane.f32.xlu0 %v848_v15  ;;  %v842_v17 = vsel %vm590_vm2, %v2823_v16, 0.0  ;;  %v2836_v23 = vpop.eup %2232 }
 0x48b   : > { %v845_v27 = vsel %vm590_vm2, %v2836_v23, 0.0 }
 0x48c   : > { %v2838_v26 = vpop.eup %2234 }
 0x48d   : > { %v854_v28 = vsel %vm590_vm2, %v2838_v26, 0.0  ;;  %v2850_v24 = vpop.eup %2236 }
 0x48e   : > { %843 = vadd.xlane.f32.xlu0 %v842_v17  ;;  %v857_v34 = vsel %vm590_vm2, %v2850_v24, 0.0 }
 0x495   : > { %927 = vrot.lane.b32.xlu1 %v2757_v0, %s2454_s18 }
 0x499   : > { %974 = vrot.lane.b32.xlu1 %v2765_v8, %s2454_s18 }
 0x49d   : > { %1021 = vrot.lane.b32.xlu1 %v2763_v6, %s2454_s18 }
 0x4a4   : > { %880 = vrot.lane.b32.xlu0 %v2759_v2, %s2454_s18 }
 0x4c1   : > { %846 = vadd.xlane.f32.xlu1 %v845_v27  ;;  %v581_v27 = vld [vmem:[#allocation7 + $0x10] sm:$0xff] }
 0x4c3   : > { %855 = vadd.xlane.f32.xlu0 %v854_v28 }
 0x4d2   : > { %1121 = vrot.lane.b32.xlu1 %v2757_v0, %s2455_s21 }
 0x4d9   : > { %1070 = vrot.lane.b32.xlu0 %v2759_v2, %s2455_s21 }
 0x4dd   : > { %1068 = vrot.lane.b32.xlu0 %v2759_v2, %s2456_s14 }
 0x4e1   : > { %1119 = vrot.lane.b32.xlu0 %v2757_v0, %s2456_s14 }
 0x4e5   : > { %1170 = vrot.lane.b32.xlu0 %v2765_v8, %s2456_s14 }
 0x4f6   : > { %858 = vadd.xlane.f32.xlu1 %v857_v34 }
 0x507   : > { %1172 = vrot.lane.b32.xlu1 %v2765_v8, %s2455_s21  ;;  %v838_v36 = vpop.xlane.xlu0 %837 }
 0x509   : > { %v841_v35 = vpop.xlane.xlu1 %840 }
 0x50a   : > { %2238 = vrcp.f32 %v841_v35 }
 0x50b   : > { %1223 = vrot.lane.b32.xlu1 %v2763_v6, %s2455_s21  ;;  %2240 = vrcp.f32 %v838_v36  ;;  %s1914_s21 = sshll.u32 %s2522_s28, 9  ;;  %s1738_s28 = scalar_lea.sflag [#allocation4], %s2671_s11 }
 0x50c   : > { %s3003_s23 = scalar_lea.hbm %s3060_s7, %s1914_s21 }
 0x50f   : > { %1221 = vrot.lane.b32.xlu1 %v2763_v6, %s2456_s14 }
 0x511   : > { %v853_v37 = vpop.xlane.xlu1 %852 }
 0x514   : > { %v2239_v40 = vpop.eup %2238 }
 0x515   : > { %v928_v38 = vpop.permute.xlu1 %927  ;;  %v2241_v44 = vpop.eup %2240  ;;  %v869_v32 = vmul.f32 %v2239_v40, %v2811_v5 }
 0x516   : > { %2021 = vmatpush3.bf16.msra.mxu1 %v928_v38  ;;  %v868_v45 = vmul.f32 %v2241_v44, %v2807_v63 }
 0x517   : > { %v850_v39 = vpop.xlane.xlu0 %849  ;;  %2032 = vmatprep.subr.bf16.mxu1 %v2451_v52 }
 0x518   : > { %2242 = vrcp.f32 %v850_v39  ;;  %v876_v25 = vpack.c.bf16 %v869_v32, %v868_v45 }
 0x519   : > { %2244 = vrcp.f32 %v853_v37  ;;  %v975_v48 = vpop.permute.xlu1 %974 }
 0x51b   : > { %v844_v41 = vpop.xlane.xlu0 %843 }
 0x51c   : > { %2246 = vrcp.f32 %v844_v41 }
 0x51d   : > { %v1022_v54 = vpop.permute.xlu1 %1021 }
 0x51f   : > { %v881_v46 = vpop.permute.xlu0 %880 }
 0x520   : > { %2015 = vmatpush3.bf16.msra.mxu0 %v881_v46 }
 0x521   : > { %2026 = vmatprep.subr.bf16.mxu0 %v2451_v52 }
 0x522   : > { %v2243_v47 = vpop.eup %2242 }
 0x523   : > { %2017 = vmatmul.mubr.msk.bf16.vlgmr.msra.gmra.mrb[8].mxu0 %vm590_vm2, %v876_v25  ;;  %v2245_v49 = vpop.eup %2244  ;;  %v872_v50 = vmul.f32 %v2243_v47, %v2819_v14 }
 0x524   : > { %2027 = vmatpush3.bf16.msra.mxu0 %v975_v48  ;;  %2028 = vmatprep.mubr.msk.bf16.mxu0 %vm2452_vm1, %v2451_v52  ;;  %v873_v51 = vmul.f32 %v2245_v49, %v2815_v12 }
 0x525   : > { %2038 = vmatprep.subr.bf16.mxu0 %v2451_v52 }
 0x526   : > { %v878_v33 = vpack.c.bf16 %v873_v51, %v872_v50  ;;  %v2247_v58 = vpop.eup %2246 }
 0x527   : > { %v870_v60 = vmul.f32 %v2247_v58, %v2823_v16 }
 0x52b   : > { %2029 = vmatmul.mubr.msk.bf16.vlgmr.msra.gmra.mrb[12].mxu0 %vm590_vm2, %v878_v33 }
 0x52c   : > { %2040 = vmatprep.mubr.msk.bf16.mxu0 %vm2452_vm1, %v2451_v52 }
 0x54e   : > { %v847_v55 = vpop.xlane.xlu1 %846 }
 0x54f   : > { %2248 = vrcp.f32 %v847_v55 }
 0x550   : > { %v856_v42 = vpop.xlane.xlu0 %855 }
 0x551   : > { %2250 = vrcp.f32 %v856_v42 }
 0x552   : > { %v1122_v62 = vpop.permute.xlu1 %1121 }
 0x553   : > { %v1127_v13 = vsel %vm590_vm2, %v1122_v62, 0 }
 0x554   : > { %v1071_v56 = vpop.permute.xlu0 %1070 }
 0x555   : > { %v1076_v57 = vsel %vm590_vm2, %v1071_v56, 0 }
 0x556   : > { %2039 = vmatpush3.bf16.xpose.msra.mxu0 %v1076_v57 }
 0x557   : > { %2050 = vmatprep.subr.bf16.mxu0 %v2451_v52 }
 0x558   : > { %v1069_v43 = vpop.permute.xlu0 %1068 }
 0x559   : > { %v2249_v59 = vpop.eup %2248 }
 0x55a   : > { %v871_v61 = vmul.f32 %v2249_v59, %v2836_v23 }
 0x55b   : > { %v2251_v5 = vpop.eup %2250 }
 0x55c   : > { %v877_v53 = vpack.c.bf16 %v871_v61, %v870_v60  ;;  %v1120_v4 = vpop.permute.xlu0 %1119  ;;  %v874_v9 = vmul.f32 %v2251_v5, %v2838_v26 }
 0x55d   : > { %2041 = vmatmul.mubr.msk.bf16.vlgmr.msra.gmra.mrb[16].mxu0 %vm590_vm2, %v1069_v43 }
 0x55e   : > { %2023 = vmatmul.mubr.msk.bf16.vlgmr.msra.gmra.mrb[16].mxu1 %vm590_vm2, %v877_v53  ;;  %2052 = vmatprep.mubr.msk.bf16.mxu0 %vm2452_vm1, %v2451_v52 }
 0x55f   : > { %2033 = vmatpush3.bf16.msra.mxu1 %v1022_v54  ;;  %2034 = vmatprep.mubr.msk.bf16.mxu1 %vm2452_vm1, %v2451_v52 }
 0x560   : > { %2044 = vmatprep.subr.bf16.mxu1 %v2451_v52  ;;  %v1171_v10 = vpop.permute.xlu0 %1170 }
 0x583   : > { %v859_v63 = vpop.xlane.xlu1 %858 }
 0x584   : > { %2252 = vrcp.f32 %v859_v63 }
 0x587   : > { %v1173_v1 = vpop.permute.xlu1 %1172 }
 0x588   : > { %v1178_v3 = vsel %vm590_vm2, %v1173_v1, 0 }
 0x589   : > { %2051 = vmatpush3.bf16.xpose.msra.mxu0 %v1178_v3 }
 0x58a   : > { %2062 = vmatprep.subr.bf16.mxu0 %v2451_v52 }
 0x58b   : > { %v1224_v14 = vpop.permute.xlu1 %1223 }
 0x58c   : > { %v1229_v15 = vsel %vm590_vm2, %v1224_v14, 0 }
 0x58e   : > { %v2253_v7 = vpop.eup %2252 }
 0x58f   : > { %v875_v11 = vmul.f32 %v2253_v7, %v2850_v24  ;;  %v1222_v16 = vpop.permute.xlu1 %1221 }
 0x590   : > { %2053 = vmatmul.mubr.msk.bf16.vlgmr.msra.gmra.mrb[20].mxu0 %vm590_vm2, %v1171_v10 }
 0x591   : > { %v879_v12 = vpack.c.bf16 %v875_v11, %v874_v9  ;;  %2064 = vmatprep.mubr.msk.bf16.mxu0 %vm2452_vm1, %v2451_v52 }
 0x593   : > { %2035 = vmatmul.mubr.msk.bf16.vlgmr.msra.gmra.mrb[20].mxu1 %vm590_vm2, %v879_v12 }
 0x594   : > { %2045 = vmatpush3.bf16.xpose.msra.mxu1 %v1127_v13  ;;  %2046 = vmatprep.mubr.msk.bf16.mxu1 %vm2452_vm1, %v2451_v52 }
 0x595   : > { %2056 = vmatprep.subr.bf16.mxu1 %v2451_v52 }
 0x59b   : > { %2047 = vmatmul.mubr.msk.bf16.vlgmr.msra.gmra.mrb[24].mxu1 %vm590_vm2, %v1120_v4 }
 0x59c   : > { %2057 = vmatpush3.bf16.xpose.msra.mxu1 %v1229_v15  ;;  %2058 = vmatprep.mubr.msk.bf16.mxu1 %vm2452_vm1, %v2451_v52 }
 0x59d   : > { %2068 = vmatprep.subr.bf16.mxu1 %v2451_v52 }
 0x5a3   : > { %2059 = vmatmul.mubr.msk.bf16.vlgmr.msra.gmra.mrb[28].mxu1 %vm590_vm2, %v1222_v16 }
 0x5a4   : > { %2070 = vmatprep.mubr.msk.bf16.mxu1 %vm2452_vm1, %v2451_v52 }
 0x5f6   : > { %v2901_v17 = vpop.f32.mrb[8].mxu0 }
 0x5f7   : > { %v2018_v18 = vpop.f32.mrb[9].mxu0 }
 0x5f8   : > { %v2903_v19 = vpop.f32.mrb[10].mxu0 }
 0x5f9   : > { %v2019_v20 = vpop.f32.mrb[11].mxu0 }
 0x5fe   : > { %v2905_v21 = vpop.f32.mrb[12].mxu0 }
 0x5ff   : > { %v2030_v22 = vpop.f32.mrb[13].mxu0 }
 0x600   : > { %v2907_v23 = vpop.f32.mrb[14].mxu0 }
 0x601   : > { %v2031_v26 = vpop.f32.mrb[15].mxu0 }
 0x630   : > { %v1112_v28 = vpop.f32.mrb[16].mxu0 }
 0x631   : > { %v1113_v30 = vadd.f32 %v1112_v28, %v581_v27  ;;  %v2909_v31 = vpop.f32.mrb[16].mxu1  ;;  %v2042_v24 = vpop.f32.mrb[17].mxu0 }
 0x632   : > { %v2024_v34 = vpop.f32.mrb[17].mxu1  ;;  %v1115_v35 = vpop.f32.mrb[18].mxu0 }
 0x633   : > { %v1116_v36 = vadd.f32 %v1115_v35, %v582_v29  ;;  %v2911_v37 = vpop.f32.mrb[18].mxu1  ;;  %v2043_v38 = vpop.f32.mrb[19].mxu0  ;;  %v1272_v39 = vsel %vm590_vm2, %v1113_v30, -inf }
 0x634   : > { %1273 = vmax.xlane.f32.xlu0 %v1272_v39  ;;  %v2025_v40 = vpop.f32.mrb[19].mxu1 }
 0x635   : > { %v1275_v41 = vsel %vm590_vm2, %v1116_v36, -inf }
 0x636   : > { %1276 = vmax.xlane.f32.xlu1 %v1275_v41 }
 0x663   : > { %v1214_v44 = vpop.f32.mrb[20].mxu0 }
 0x664   : > { %v2054_v32 = vpop.f32.mrb[21].mxu0  ;;  %v1215_v59 = vadd.f32 %v1214_v44, %v581_v27 }
 0x665   : > { %v1217_v45 = vpop.f32.mrb[22].mxu0 }
 0x666   : > { %v1218_v46 = vadd.f32 %v1217_v45, %v582_v29  ;;  %v2915_v25 = vpop.f32.mrb[20].mxu1  ;;  %v2055_v47 = vpop.f32.mrb[23].mxu0  ;;  %v1284_v3 = vsel %vm590_vm2, %v1215_v59, -inf }
 0x667   : > { %v2036_v48 = vpop.f32.mrb[21].mxu1 }
 0x668   : > { %v2917_v49 = vpop.f32.mrb[22].mxu1  ;;  %v1287_v50 = vsel %vm590_vm2, %v1218_v46, -inf }
 0x669   : > { %1288 = vmax.xlane.f32.xlu1 %v1287_v50  ;;  %v2037_v51 = vpop.f32.mrb[23].mxu1 }
 0x66e   : > { %v1163_v33 = vpop.f32.mrb[24].mxu1 }
 0x66f   : > { %v1164_v54 = vadd.f32 %v1163_v33, %v581_v27  ;;  %v2048_v55 = vpop.f32.mrb[25].mxu1 }
 0x670   : > { %v1166_v42 = vpop.f32.mrb[26].mxu1 }
 0x671   : > { %v1167_v56 = vadd.f32 %v1166_v42, %v582_v29  ;;  %v2049_v57 = vpop.f32.mrb[27].mxu1  ;;  %v1278_v58 = vsel %vm590_vm2, %v1164_v54, -inf }
 0x672   : > { %1279 = vmax.xlane.f32.xlu0 %v1278_v58 }
 0x673   : > { %v1281_v60 = vsel %vm590_vm2, %v1167_v56, -inf }
 0x676   : > { %1282 = vmax.xlane.f32.xlu0 %v1281_v60  ;;  %v1265_v61 = vpop.f32.mrb[28].mxu1 }
 0x677   : > { %v2060_v43 = vpop.f32.mrb[29].mxu1  ;;  %v1266_v62 = vadd.f32 %v1265_v61, %v581_v27 }
 0x678   : > { %v1268_v53 = vpop.f32.mrb[30].mxu1 }
 0x679   : > { %v2922_v63 = vadd.f32 %v1268_v53, %v582_v29  ;;  %v2061_v1 = vpop.f32.mrb[31].mxu1  ;;  %v1290_v5 = vsel %vm590_vm2, %v1266_v62, -inf }
 0x67a   : > { %1285 = vmax.xlane.f32.xlu0 %v1284_v3 }
 0x67b   : > { %v1293_v4 = vsel %vm590_vm2, %v2922_v63, -inf }
 0x67c   : > { %1294 = vmax.xlane.f32.xlu1 %v1293_v4 }
 0x67e   : > { %1291 = vmax.xlane.f32.xlu0 %v1290_v5 }
 0x6c1   : > { %v1274_v7 = vpop.xlane.xlu0 %1273 }
 0x6c2   : > { %v1296_v9 = vsub.f32 %v1113_v30, %v1274_v7 }
 0x6c3   : > { %v1277_v10 = vpop.xlane.xlu1 %1276 }
 0x6c4   : > { %v1304_v11 = vmul.f32 1.442695, %v1296_v9  ;;  %v1297_v12 = vsub.f32 %v1116_v36, %v1277_v10 }
 0x6c6   : > { %2254 = vpow2.f32 %v1304_v11  ;;  %v1306_v13 = vmul.f32 1.442695, %v1297_v12 }
 0x6c8   : > { %2256 = vpow2.f32 %v1306_v13 }
 0x6d0   : > { %v2928_v14 = vpop.eup %2254 }
 0x6d1   : > { %v1320_v15 = vsel %vm590_vm2, %v2928_v14, 0.0 }
 0x6d2   : > { %v2932_v16 = vpop.eup %2256  ;;  %1321 = vadd.xlane.f32.xlu0 %v1320_v15 }
 0x6d3   : > { %v1323_v18 = vsel %vm590_vm2, %v2932_v16, 0.0 }
 0x6d4   : > { %1324 = vadd.xlane.f32.xlu1 %v1323_v18 }
 0x6f6   : > { %v1289_v20 = vpop.xlane.xlu1 %1288 }
 0x6f7   : > { %v1301_v27 = vsub.f32 %v1218_v46, %v1289_v20 }
 0x6f9   : > { %v1314_v24 = vmul.f32 1.442695, %v1301_v27 }
 0x6ff   : > { %v1280_v22 = vpop.xlane.xlu0 %1279 }
 0x700   : > { %v1298_v26 = vsub.f32 %v1164_v54, %v1280_v22 }
 0x702   : > { %v1308_v28 = vmul.f32 1.442695, %v1298_v26 }
 0x703   : > { %v1283_v29 = vpop.xlane.xlu0 %1282 }
 0x704   : > { %2258 = vpow2.f32 %v1308_v28  ;;  %v1299_v30 = vsub.f32 %v1167_v56, %v1283_v29 }
 0x706   : > { %v1310_v34 = vmul.f32 1.442695, %v1299_v30 }
 0x707   : > { %v1286_v35 = vpop.xlane.xlu0 %1285 }
 0x708   : > { %2260 = vpow2.f32 %v1310_v34  ;;  %v1300_v36 = vsub.f32 %v1215_v59, %v1286_v35 }
 0x709   : > { %2262 = vpow2.f32 %v1314_v24  ;;  %v1295_v55 = vpop.xlane.xlu1 %1294  ;;  %v2205_v24 = vld [vmem:[%s3058_s5 + $0x8] sm:$0xff]  }
 0x70a   : > { %v1312_v38 = vmul.f32 1.442695, %v1300_v36  ;;  %v1303_v42 = vsub.f32 %v2922_v63, %v1295_v55 }
 0x70b   : > { %v1292_v39 = vpop.xlane.xlu0 %1291 }
 0x70c   : > { %2264 = vpow2.f32 %v1312_v38  ;;  %v1302_v40 = vsub.f32 %v1266_v62, %v1292_v39  ;;  %v1318_v56 = vmul.f32 1.442695, %v1303_v42 }
 0x70e   : > { %v2259_v41 = vpop.eup %2258  ;;  %v1316_v44 = vmul.f32 1.442695, %v1302_v40 }
 0x70f   : > { %v1326_v32 = vsel %vm590_vm2, %v2259_v41, 0.0 }
 0x710   : > { %2266 = vpow2.f32 %v1316_v44  ;;  %1327 = vadd.xlane.f32.xlu0 %v1326_v32 }
 0x711   : > { %2268 = vpow2.f32 %v1318_v56 }
 0x712   : > { %v2261_v45 = vpop.eup %2260 }
 0x713   : > { %v1329_v46 = vsel %vm590_vm2, %v2261_v45, 0.0  ;;  %v2263_v47 = vpop.eup %2262 }
 0x714   : > { %1330 = vadd.xlane.f32.xlu1 %v1329_v46  ;;  %v1335_v51 = vsel %vm590_vm2, %v2263_v47, 0.0 }
 0x716   : > { %v2265_v48 = vpop.eup %2264 }
 0x717   : > { %v1332_v50 = vsel %vm590_vm2, %v2265_v48, 0.0 }
 0x718   : > { %1333 = vadd.xlane.f32.xlu0 %v1332_v50  ;;  %1336 = vadd.xlane.f32.xlu1 %v1335_v51 }
 0x71a   : > { %v2940_v33 = vpop.eup %2266 }
 0x71b   : > { %v1338_v54 = vsel %vm590_vm2, %v2940_v33, 0.0  ;;  %v2269_v57 = vpop.eup %2268 }
 0x71c   : > { %1339 = vadd.xlane.f32.xlu0 %v1338_v54  ;;  %v1341_v58 = vsel %vm590_vm2, %v2269_v57, 0.0 }
 0x729   : > { %1411 = vrot.lane.b32.xlu1 %v2757_v0, %s2457_s22 }
 0x72d   : > { %1458 = vrot.lane.b32.xlu1 %v2765_v8, %s2457_s22 }
 0x732   : > { %1364 = vrot.lane.b32.xlu0 %v2759_v2, %s2457_s22 }
 0x751   : > { %1342 = vadd.xlane.f32.xlu1 %v1341_v58 }
 0x75f   : > { %v1322_v59 = vpop.xlane.xlu0 %1321 }
 0x761   : > { %v1325_v60 = vpop.xlane.xlu1 %1324 }
 0x762   : > { %1505 = vrot.lane.b32.xlu1 %v2763_v6, %s2457_s22  ;;  %2270 = vrcp.f32 %v1325_v60 }
 0x763   : > { %2272 = vrcp.f32 %v1322_v59 }
 0x76c   : > { %v2271_v43 = vpop.eup %2270 }
 0x76d   : > { %v2273_v53 = vpop.eup %2272  ;;  %v1353_v6 = vmul.f32 %v2271_v43, %v2932_v16 }
 0x76e   : > { %v1352_v4 = vmul.f32 %v2273_v53, %v2928_v14 }
 0x770   : > { %v1360_v10 = vpack.c.bf16 %v1353_v6, %v1352_v4 }
 0x79d   : > { %v1328_v61 = vpop.xlane.xlu0 %1327 }
 0x79e   : > { %2274 = vrcp.f32 %v1328_v61 }
 0x7a1   : > { %v1331_v0 = vpop.xlane.xlu1 %1330 }
 0x7a2   : > { %2276 = vrcp.f32 %v1331_v0 }
 0x7a5   : > { %v1334_v2 = vpop.xlane.xlu0 %1333  ;;  %v1337_v8 = vpop.xlane.xlu1 %1336 }
 0x7a6   : > { %2278 = vrcp.f32 %v1334_v2 }
 0x7a7   : > { %2280 = vrcp.f32 %v1337_v8 }
 0x7a8   : > { %v2275_v1 = vpop.eup %2274 }
 0x7a9   : > { %v1340_v62 = vpop.xlane.xlu0 %1339  ;;  %v1412_v63 = vpop.permute.xlu1 %1411  ;;  %v1354_v5 = vmul.f32 %v2275_v1, %v2259_v41 }
 0x7aa   : > { %2069 = vmatpush3.bf16.msra.mxu1 %v1412_v63  ;;  %2282 = vrcp.f32 %v1340_v62 }
 0x7ab   : > { %2080 = vmatprep.subr.bf16.mxu1 %v2451_v52 }
 0x7ac   : > { %v2277_v3 = vpop.eup %2276 }
 0x7ad   : > { %v1355_v7 = vmul.f32 %v2277_v3, %v2261_v45  ;;  %v1365_v9 = vpop.permute.xlu0 %1364  ;;  %v1459_v15 = vpop.permute.xlu1 %1458 }
 0x7ae   : > { %2063 = vmatpush3.bf16.msra.mxu0 %v1365_v9 }
 0x7af   : > { %v1361_v11 = vpack.c.bf16 %v1355_v7, %v1354_v5  ;;  %2074 = vmatprep.subr.bf16.mxu0 %v2451_v52 }
 0x7b0   : > { %v2279_v12 = vpop.eup %2278 }
 0x7b1   : > { %v2281_v13 = vpop.eup %2280  ;;  %2065 = vmatmul.mubr.msk.bf16.vlgmr.msra.gmra.mrb[24].mxu0 %vm590_vm2, %v1360_v10  ;;  %2071 = vmatmul.mubr.msk.bf16.vlgmr.msra.gmra.mrb[32].mxu1 %vm590_vm2, %v1361_v11  ;;  %v1356_v14 = vmul.f32 %v2279_v12, %v2265_v48 }
 0x7b2   : > { %2075 = vmatpush3.bf16.msra.mxu0 %v1459_v15  ;;  %2076 = vmatprep.mubr.msk.bf16.mxu0 %vm2452_vm1, %v2451_v52  ;;  %v1357_v16 = vmul.f32 %v2281_v13, %v2263_v47 }
 0x7b3   : > { %2082 = vmatprep.mubr.msk.bf16.mxu1 %vm2452_vm1, %v2451_v52  ;;  %v2204_v52 = vld [vmem:[%s3058_s5] sm:$0xff]  }
 0x7b4   : > { %v1362_v18 = vpack.c.bf16 %v1357_v16, %v1356_v14  ;;  %v2283_v26 = vpop.eup %2282  ;;  %2086 = vmatprep.subr.bf16.mxu0 %v2204_v52 }
 0x7b5   : > { %v1358_v28 = vmul.f32 %v2283_v26, %v2940_v33 }
 0x7b9   : > { %2077 = vmatmul.mubr.msk.bf16.vlgmr.msra.gmra.mrb[28].mxu0 %vm590_vm2, %v1362_v18 }
 0x7ba   : > { %2087 = vmatpush3.bf16.msra.mxu0 %v2204_v52 }
 0x7bb   : > { %2088 = vmatprep.subr.bf16.mxu0 %v2205_v24 }
 0x7be   : > { %2089 = vmatpush3.bf16.msra.mxu0 %v2205_v24 }
 0x7de   : > { %v1343_v20 = vpop.xlane.xlu1 %1342 }
 0x7df   : > { %2284 = vrcp.f32 %v1343_v20 }
 0x7e2   : > { %v1506_v22 = vpop.permute.xlu1 %1505 }
 0x7e3   : > { %2081 = vmatpush3.bf16.msra.mxu1 %v1506_v22 }
 0x7e9   : > { %v2285_v27 = vpop.eup %2284 }
 0x7ea   : > { %v1359_v29 = vmul.f32 %v2285_v27, %v2269_v57 }
 0x7ec   : > { %v1363_v30 = vpack.c.bf16 %v1359_v29, %v1358_v28 }
 0x7ee   : > { %2083 = vmatmul.mubr.msk.bf16.vlgmr.msra.gmra.mrb[36].mxu1 %vm590_vm2, %v1363_v30 }
 0x884   : > { %v1404_v34 = vpop.f32.mrb[24].mxu0  ;;  %v1451_v35 = vpop.f32.mrb[32].mxu1 }
 0x885   : > { %v2066_v36 = vpop.f32.mrb[25].mxu0  ;;  %v2072_v38 = vpop.f32.mrb[33].mxu1 }
 0x886   : > { %v1407_v39 = vpop.f32.mrb[26].mxu0  ;;  %v1454_v40 = vpop.f32.mrb[34].mxu1 }
 0x887   : > { %v2182_v41 = vpack.i.bf16 %v1407_v39, %v1404_v34  ;;  %v2187_v44 = vpack.i.bf16 %v1454_v40, %v1451_v35  ;;  %v2067_v32 = vpop.f32.mrb[27].mxu0  ;;  %v2073_v45 = vpop.f32.mrb[35].mxu1 }
 0x889   : > { %2183 = vrot.lane.b32.xlu0 %v2182_v41, %s2458_s9  ;;  %2188 = vrot.lane.b32.xlu1 %v2187_v44, %s2458_s9 }
 0x88c   : > { %v1498_v46 = vpop.f32.mrb[28].mxu0 }
 0x88d   : > { %v2078_v47 = vpop.f32.mrb[29].mxu0 }
 0x88e   : > { %v1501_v48 = vpop.f32.mrb[30].mxu0 }
 0x88f   : > { %v2192_v50 = vpack.i.bf16 %v1501_v48, %v1498_v46  ;;  %v2079_v51 = vpop.f32.mrb[31].mxu0 }
 0x891   : > { %2193 = vrot.lane.b32.xlu0 %v2192_v50, %s2458_s9 }
 0x8c1   : > { %v1545_v33 = vpop.f32.mrb[36].mxu1 }
 0x8c2   : > { %v2084_v54 = vpop.f32.mrb[37].mxu1 }
 0x8c3   : > { %v1548_v55 = vpop.f32.mrb[38].mxu1 }
 0x8c4   : > { %v2197_v42 = vpack.i.bf16 %v1548_v55, %v1545_v33  ;;  %v2085_v56 = vpop.f32.mrb[39].mxu1 }
 0x8c6   : > { %2198 = vrot.lane.b32.xlu1 %v2197_v42, %s2458_s9  ;;  %s2378_s9 = scalar_lea.vmem %s2377_s30, 1024 }
 0x8c7   : > { %p2380_p13 = scmp.lt.s32.totalorder %s2378_s9, %s2372_s12 }
 0x8c9   : > { %p2381_p3 = por %p2380_p13, %p2379_p11 }
 0x8cb   : > { %p2382_p7 = pnand %p2381_p3, %p2375_p6 }
 0x8fb   : > { %v2184_v57 = vpop.permute.xlu0 %2183  ;;  %v2189_v58 = vpop.permute.xlu1 %2188 }
 0x8fc   : > { %v2186_v59 = vunpack.i.h.bf16 %v2184_v57  ;;  %v2185_v60 = vunpack.i.l.bf16 %v2184_v57  ;;  %v2191_v61 = vunpack.i.h.bf16 %v2189_v58  ;;  %v2190_v0 = vunpack.i.l.bf16 %v2189_v58 }
 0x8fe   : > { %v1585_v2 = vsel %vm590_vm2, %v2903_v19, %v2186_v59  ;;  %v1584_v8 = vsel %vm590_vm2, %v2901_v17, %v2185_v60  ;;  %v1587_v43 = vsel %vm590_vm2, %v2911_v37, %v2191_v61  ;;  %v1586_v53 = vsel %vm590_vm2, %v2909_v31, %v2190_v0 }
 0x8ff   : > { %v1592_v62 = vpack.c.bf16 %v1585_v2, %v1584_v8  ;;  %v1593_v63 = vpack.c.bf16 %v1587_v43, %v1586_v53 }
 0x901   : > { %2090 = vmatprep.mubr.msk.bf16.mxu0 %vm346_vm0, %v1592_v62 }
 0x902   : > { %2091 = vmatmul.mubr.msk.bf16.vlgmr.msra.gmra.mrb[32].mxu0 %vm346_vm0, %v1593_v63 }
 0x903   : > { %v2194_v1 = vpop.permute.xlu0 %2193 }
 0x904   : > { %v2196_v6 = vunpack.i.h.bf16 %v2194_v1  ;;  %v2195_v3 = vunpack.i.l.bf16 %v2194_v1 }
 0x906   : > { %v1589_v19 = vsel %vm590_vm2, %v2907_v23, %v2196_v6  ;;  %v1588_v17 = vsel %vm590_vm2, %v2905_v21, %v2195_v3  ;;  %v1882_v21 = vld [vmem:[%s3059_s6] ss:$0 sm:$0xff] }
 0x907   : > { %v1594_v4 = vpack.c.bf16 %v1589_v19, %v1588_v17 }
 0x909   : > { %2094 = vmatprep.mubr.msk.bf16.mxu0 %vm346_vm0, %v1594_v4 }
 0x938   : > { %v2199_v37 = vpop.permute.xlu1 %2198 }
 0x939   : > { %v2201_v31 = vunpack.i.h.bf16 %v2199_v37  ;;  %v2200_v5 = vunpack.i.l.bf16 %v2199_v37 }
 0x93b   : > { %v1591_v7 = vsel %vm590_vm2, %v2917_v49, %v2201_v31  ;;  %v1590_v9 = vsel %vm590_vm2, %v2915_v25, %v2200_v5 }
 0x93c   : > { %v1595_v10 = vpack.c.bf16 %v1591_v7, %v1590_v9 }
 0x93e   : > { %2095 = vmatmul.mubr.msk.bf16.gmra.mrb[36].mxu0 %vm346_vm0, %v1595_v10 }
 0x9d5   : > { %v2092_v23 = vpop.f32.mrb[32].mxu0 }
 0x9d6   : > { %v1674_v11 = vadd.f32 %v2092_v23, %v1882_v21  ;;  %v1665_v12 = vpop.f32.mrb[33].mxu0 }
 0x9d7   : > { %v1666_v13 = vadd.f32 %v1882_v21, %v1665_v12  ;;  %v2093_v15 = vpop.f32.mrb[34].mxu0 }
 0x9d8   : > { %v1907_v14 = vpack.c.bf16 %v1674_v11, %v1674_v11  ;;  %v1677_v16 = vadd.f32 %v2093_v15, %v1882_v21  ;;  %v1668_v49 = vpop.f32.mrb[35].mxu0 }
 0x9d9   : > { %v1905_v18 = vpack.c.bf16 %v1666_v13, %v1666_v13  ;;  %v1669_v20 = vadd.f32 %v1882_v21, %v1668_v49 }
 0x9da   : > { %1731 = vst.msk [vmem:[%s326_s15 + $0x8] sm:$0xf] %vm1728_vm3, %v1907_v14  ;;  %v1908_v25 = vpack.c.bf16 %v1677_v16, %v1677_v16 }
 0x9db   : > { %1729 = vst.msk [vmem:[%s326_s15] sm:$0xf] %vm1728_vm3, %v1905_v18  ;;  %v1906_v22 = vpack.c.bf16 %v1669_v20, %v1669_v20 }
 0x9dc   : > { %1732 = vst.msk [vmem:[%s326_s15 + $0xc] sm:$0xf] %vm1728_vm3, %v1908_v25 }
 0x9dd   : > { %1730 = vst.msk [vmem:[%s326_s15 + $0x4] sm:$0xf] %vm1728_vm3, %v1906_v22 }
 0xa11   : > { %v2096_v26 = vpop.f32.mrb[36].mxu0 }
 0xa12   : > { %v1690_v27 = vadd.f32 %v2096_v26, %v1882_v21  ;;  %v1681_v28 = vpop.f32.mrb[37].mxu0 }
 0xa13   : > { %v1682_v29 = vadd.f32 %v1882_v21, %v1681_v28  ;;  %v2097_v30 = vpop.f32.mrb[38].mxu0 }
 0xa14   : > { %v1911_v52 = vpack.c.bf16 %v1690_v27, %v1690_v27  ;;  %v1693_v24 = vadd.f32 %v2097_v30, %v1882_v21  ;;  %v1684_v34 = vpop.f32.mrb[39].mxu0 }
 0xa15   : > { %v1909_v35 = vpack.c.bf16 %v1682_v29, %v1682_v29  ;;  %v1685_v36 = vadd.f32 %v1882_v21, %v1684_v34 }
 0xa16   : > { %1735 = vst.msk [vmem:[%s326_s15 + $0x18] sm:$0xf] %vm1728_vm3, %v1911_v52  ;;  %v1912_v38 = vpack.c.bf16 %v1693_v24, %v1693_v24 }
 0xa17   : > { %1733 = vst.msk [vmem:[%s326_s15 + $0x10] sm:$0xf] %vm1728_vm3, %v1909_v35  ;;  %v1910_v39 = vpack.c.bf16 %v1685_v36, %v1685_v36 }
 0xa18   : > { %1736 = vst.msk [vmem:[%s326_s15 + $0x1c] sm:$0xf] %vm1728_vm3, %v1912_v38 }
 0xa19   : > { %1734 = vst.msk [vmem:[%s326_s15 + $0x14] sm:$0xf] %vm1728_vm3, %v1910_v39 }
 0xa1a   : > { %2385 = shalt.err (!%p2382_p7)
}
 0xa1b   : > { %s2386_s29 = scalar_lea.hbm %s3003_s23, 512  ;;  %s2390_s21 = scalar_lea.hbm %s3060_s7, 4096 }
 0xa1c   : > { %p2387_p9 = scmp.ne.s32.totalorder %s3003_s23, %s2386_s29  ;;  %p2391_p5 = scmp.lt.u32.totalorder %s3003_s23, %s3060_s7 }
 0xa1d   : > { %p2392_p10 = scmp.lt.u32.totalorder %s2390_s21, %s2386_s29  ;;  %p2394_p2 = scmp.lt.u32.totalorder %s2386_s29, %s3003_s23 }
 0xa1e   : > { %p2388_p12 = pnand %p2387_p9, %p2619_p8 }
 0xa1f   : > { %p2393_p1 = por %p2392_p10, %p2391_p5 }
 0xa20   : > { %p2389_p0 = pneg %p2388_p12 }
 0xa21   : > { %p2395_p4 = por %p2394_p2, %p2393_p1 }
 0xa23   : > { %p2396_p6 = pnand %p2395_p4, %p2389_p0 }
 0xa25   : > { %2399 = shalt.err (!%p2396_p6)
}
 0xa26   : > { %s2460_s12 = smov 4  }
 0xa27   : > { %2112 = dma.vmem_to_hbm [thread:$0]  (%p2619_p8), %s3006_s13, 512, %s3003_s23, %s1738_s28, %s2454_s18, %s2454_s18, %s2460_s12  }
 0xa28 PF: > { %p2134_p11 = scmp.ge.s32.totalorder %s2442_s27, 2  ;;  %s1767_s17 = sand.u32 1, %s2430_s24  }
 0xa29   : > { %p3077_p13 = scmp.ne.s32.totalorder %s3066_s8, 0  ;;  %s1768_s30 = scalar_lea.sflag [#allocation4], %s1767_s17 }
 0xa2b   : > { %p2126_p3 = pnand %p2134_p11, %p3077_p13 }
 0xa2d   : > { %2425 = dma.done.wait (!%p2126_p3), %s1768_s30, 512  }
 0xa2e   : > { %2427 = vsyncadd (!%p2126_p3), %s1768_s30, 4294966784  ;;  %p21_p7 = scmp.ge.s32.totalorder %s2606_s16, 10   ;;  %s3078_s24 = smov %s2434_s25 }
 0xa2f   : > { %s3079_s25 = smov %s2438_s26  ;;  %s3080_s26 = smov %s2615_s19 }
 0xa30   : > { %s3081_s27 = smov %s2606_s16  ;;  %23 = sbr.rel (!%p21_p7) target bundleno = 6 (0x6), region = 101 }
 0xa37   :  { %1773 = vsyncpa [#allocation3], 1 }
 0xa38   :  { %1775 = vsyncpa [#allocation3 + $0x1], 1 }
 0xa39   :  { %1776 = vsyncpa [#allocation6], 1 }
 0xa3a   :  { %1777 = vsyncpa [#allocation4], 1 }
 0xa3b   :  { %1779 = vsyncpa [#allocation4 + $0x1], 1 }

</bundles_post_ra>
